<compile_context>
chip_gen: v6e
topology: v6e:2x2x1
jax: 0.10.0
libtpu: 0.0.40
codegen_flags: <defaults>
</compile_context>

<pallas_src>
import jax
import jax.numpy as jnp
from jax.experimental import pallas as pl
from jax.experimental.pallas import tpu as pltpu

# ---- small synthetic BERT config ----
VOCAB = 100
HIDDEN = 32
N_HEADS = 4
HEAD_DIM = HIDDEN // N_HEADS
INTER = 64
N_LAYERS = 2
MAX_POS = 16
NUM_LABELS = 6            # TREC has 6 classes
NUM_LABELS_PAD = 128      # lane-dense FC output; sliced back in the wrapper
LN_EPS = 1e-12
INIT_STD = 0.02
NEG_INF = -1e9


# ---------------- in-kernel helpers ----------------
def _layernorm(x, gamma, beta, eps=LN_EPS):
    mu = jnp.mean(x, axis=-1, keepdims=True)
    var = jnp.mean((x - mu) ** 2, axis=-1, keepdims=True)
    return (x - mu) * jax.lax.rsqrt(var + eps) * gamma + beta


def _gelu(x):
    # TODO(synk): BERT uses erf-based gelu; tanh approximation used for robust TPU lowering.
    return 0.5 * x * (1.0 + jnp.tanh(0.7978845608028654 * (x + 0.044715 * x * x * x)))


def _bf16(x):
    return x.astype(jnp.bfloat16)


# ---------------- fused Pallas kernel ----------------
def fused_backbone_kernel(
        x_ref, bias_ref, pool_ref,
        emb_g_ref, emb_b_ref,
        wq_ref, bq_ref, wk_ref, bk_ref, wv_ref, bv_ref, wo_ref, bo_ref,
        ln1g_ref, ln1b_ref,
        w1_ref, b1_ref, w2_ref, b2_ref,
        ln2g_ref, ln2b_ref,
        fcw_ref, fcb_ref,
        out_ref):
    BS, H = x_ref.shape

    # Embedding LayerNorm on the whole (B*S, H) slab.
    h = _layernorm(x_ref[...], emb_g_ref[...], emb_b_ref[...])

    bias = bias_ref[...]                      # (BS, BS) additive attention bias
    scale = 1.0 / (HEAD_DIM ** 0.5)

    # Hoisted per-head 0/1 lane masks (computed once; broadcast is not CSE'd
    # by JAX, so do NOT rebuild these inside the unrolled layer/head loops).
    lane = jax.lax.broadcasted_iota(jnp.int32, (1, H), 1)
    head_masks = [
        ((lane >= hd * HEAD_DIM) & (lane < (hd + 1) * HEAD_DIM)).astype(jnp.float32)
        for hd in range(N_HEADS)
    ]

    for l in range(N_LAYERS):                 # static unroll; weights stay in VMEM
        xb = _bf16(h)
        q = jnp.dot(xb, wq_ref[l], preferred_element_type=jnp.float32) + bq_ref[l]
        k = jnp.dot(xb, wk_ref[l], preferred_element_type=jnp.float32) + bk_ref[l]
        v = jnp.dot(xb, wv_ref[l], preferred_element_type=jnp.float32) + bv_ref[l]

        # Fold the 1/sqrt(head_dim) scale into q once (cheaper than scaling
        # every per-head (BS,BS) score matrix).
        q = q * scale

        kb = _bf16(k)
        ctx = jnp.zeros((BS, H), jnp.float32)
        for hd in range(N_HEADS):
            head_mask = head_masks[hd]
            # q's off-head lanes are zeroed, so contracting against the FULL k
            # only picks up this head's lanes -> no lane slicing needed.
            qh = _bf16(q * head_mask)
            s = jnp.einsum('qd,kd->qk', qh, kb,
                           preferred_element_type=jnp.float32) + bias
            s = s - jnp.max(s, axis=-1, keepdims=True)
            p = jnp.exp(s)
            p = p * pl.reciprocal(jnp.sum(p, axis=-1, keepdims=True), approx=True)
            vh = _bf16(v * head_mask)         # head-hd lanes of v, zero elsewhere
            ctx = ctx + jnp.dot(_bf16(p), vh, preferred_element_type=jnp.float32)

        attn = jnp.dot(_bf16(ctx), wo_ref[l],
                       preferred_element_type=jnp.float32) + bo_ref[l]
        h1 = _layernorm(h + attn, ln1g_ref[l], ln1b_ref[l])

        ff = _gelu(jnp.dot(_bf16(h1), w1_ref[l],
                           preferred_element_type=jnp.float32) + b1_ref[l])
        ff = jnp.dot(_bf16(ff), w2_ref[l],
                     preferred_element_type=jnp.float32) + b2_ref[l]
        h = _layernorm(h1 + ff, ln2g_ref[l], ln2b_ref[l])

    # Masked mean-pooling as one matmul: (B, BS) @ (BS, H) -> (B, H)
    mean_emb = jnp.dot(pool_ref[...], _bf16(h),
                       preferred_element_type=jnp.float32)
    # FC to a lane-dense, 128-wide padded output (unmasked vst).
    out_ref[...] = jnp.dot(_bf16(mean_emb), fcw_ref[...],
                           preferred_element_type=jnp.float32) + fcb_ref[...]


# ---------------- pallas_call wrapper ----------------
def _vspec(shape):
    zeros = (0,) * len(shape)
    return pl.BlockSpec(shape, lambda i, _z=zeros: _z)


def backbone_forward(params, input_ids, attention_mask, token_type_ids=None, labels=None):
    B, S = input_ids.shape
    BS = B * S
    if token_type_ids is None:
        token_type_ids = jnp.zeros_like(input_ids)

    # glue: embedding gathers (word + position + token_type)
    emb = (params['word_emb'][input_ids]
           + params['pos_emb'][jnp.arange(S)][None, :, :]
           + params['type_emb'][token_type_ids]).astype(jnp.float32)
    x = emb.reshape(BS, HIDDEN)

    mask_f = attention_mask.astype(jnp.float32)                 # (B, S)

    # Additive attention bias on the flattened (B*S, B*S) score matrix:
    # forbid cross-batch attention and attention to padded key positions.
    batch_ids = jnp.repeat(jnp.arange(B), S)
    same_batch = batch_ids[:, None] == batch_ids[None, :]
    key_valid = mask_f.reshape(-1) > 0.5
    attn_bias = jnp.where(same_batch & key_valid[None, :], 0.0, NEG_INF).astype(jnp.float32)

    # Masked-mean pooling matrix (B, B*S): row b = mask_b / clamp(sum mask_b, 1e-9)
    sum_mask = jnp.maximum(jnp.sum(mask_f, axis=1, keepdims=True), 1e-9)
    pool_w = mask_f / sum_mask                                   # (B, S)
    pool_mat = (jnp.eye(B, dtype=jnp.float32)[:, :, None]
                * pool_w[:, None, :]).reshape(B, BS).astype(jnp.bfloat16)

    stk = params['stacked']
    inputs = [
        x, attn_bias, pool_mat,
        params['emb_ln_g'], params['emb_ln_b'],
        stk['wq'], stk['bq'], stk['wk'], stk['bk'], stk['wv'], stk['bv'],
        stk['wo'], stk['bo'], stk['ln1g'], stk['ln1b'],
        stk['w1'], stk['b1'], stk['w2'], stk['b2'],
        stk['ln2g'], stk['ln2b'],
        params['fc_w_pad'], params['fc_b_pad'],
    ]
    in_specs = [_vspec(a.shape) for a in inputs]

    logits_pad = pl.pallas_call(
        fused_backbone_kernel,
        out_shape=jax.ShapeDtypeStruct((B, NUM_LABELS_PAD), jnp.float32),
        grid=(1,),
        in_specs=in_specs,
        out_specs=_vspec((B, NUM_LABELS_PAD)),
        compiler_params=pltpu.CompilerParams(
            dimension_semantics=("arbitrary",),
            vmem_limit_bytes=32 * 1024 * 1024),
    )(*inputs)

    logits = logits_pad[:, :NUM_LABELS]
    if labels is not None:
        # The reference Backbone.forward returns loss = 0 (never computed).
        return {'loss': 0, 'logits': logits}
    return {'logits': logits}


# ---------------- parameters (deterministic, synthetic) ----------------
def init_params(key):
    keys = jax.random.split(key, 4 + N_LAYERS)
    p = {
        'word_emb': INIT_STD * jax.random.normal(keys[0], (VOCAB, HIDDEN), jnp.float32),
        'pos_emb': INIT_STD * jax.random.normal(keys[1], (MAX_POS, HIDDEN), jnp.float32),
        'type_emb': INIT_STD * jax.random.normal(keys[2], (2, HIDDEN), jnp.float32),
        'emb_ln_g': jnp.ones((1, HIDDEN), jnp.float32),
        'emb_ln_b': jnp.zeros((1, HIDDEN), jnp.float32),
    }

    def nrm(k, shape):
        return INIT_STD * jax.random.normal(k, shape, jnp.float32)

    wq, wk, wv, wo, w1, w2 = [], [], [], [], [], []
    for i in range(N_LAYERS):
        lk = jax.random.split(keys[3 + i], 6)
        wq.append(nrm(lk[0], (HIDDEN, HIDDEN)))
        wk.append(nrm(lk[1], (HIDDEN, HIDDEN)))
        wv.append(nrm(lk[2], (HIDDEN, HIDDEN)))
        wo.append(nrm(lk[3], (HIDDEN, HIDDEN)))
        w1.append(nrm(lk[4], (HIDDEN, INTER)))
        w2.append(nrm(lk[5], (INTER, HIDDEN)))

    L = N_LAYERS
    p['stacked'] = {
        # matmul weights in bf16 (MXU inputs); accumulation stays f32 in-kernel.
        'wq': jnp.stack(wq).astype(jnp.bfloat16),
        'wk': jnp.stack(wk).astype(jnp.bfloat16),
        'wv': jnp.stack(wv).astype(jnp.bfloat16),
        'wo': jnp.stack(wo).astype(jnp.bfloat16),
        'w1': jnp.stack(w1).astype(jnp.bfloat16),
        'w2': jnp.stack(w2).astype(jnp.bfloat16),
        # biases / LayerNorm params stay f32 (elementwise math in f32).
        'bq': jnp.zeros((L, 1, HIDDEN), jnp.float32),
        'bk': jnp.zeros((L, 1, HIDDEN), jnp.float32),
        'bv': jnp.zeros((L, 1, HIDDEN), jnp.float32),
        'bo': jnp.zeros((L, 1, HIDDEN), jnp.float32),
        'b1': jnp.zeros((L, 1, INTER), jnp.float32),
        'b2': jnp.zeros((L, 1, HIDDEN), jnp.float32),
        'ln1g': jnp.ones((L, 1, HIDDEN), jnp.float32),
        'ln1b': jnp.zeros((L, 1, HIDDEN), jnp.float32),
        'ln2g': jnp.ones((L, 1, HIDDEN), jnp.float32),
        'ln2b': jnp.zeros((L, 1, HIDDEN), jnp.float32),
    }

    # self.fc: Linear(hidden_size, num_labels), _init_weights (std=0.02, bias=0),
    # zero-padded to a 128-wide lane-dense output (wrapper slices logits back).
    fc_w = nrm(keys[3 + N_LAYERS], (HIDDEN, NUM_LABELS)).astype(jnp.bfloat16)
    p['fc_w_pad'] = jnp.zeros((HIDDEN, NUM_LABELS_PAD), jnp.bfloat16).at[:, :NUM_LABELS].set(fc_w)
    p['fc_b_pad'] = jnp.zeros((1, NUM_LABELS_PAD), jnp.float32)
    return p


if __name__ == "__main__":
    key = jax.random.PRNGKey(0)
    pkey, ikey = jax.random.split(key)
    params = init_params(pkey)

    B, S = 2, 8
    input_ids = jax.random.randint(ikey, (B, S), 0, VOCAB, dtype=jnp.int32)
    attention_mask = jnp.array([[1, 1, 1, 1, 1, 1, 1, 1],
                                [1, 1, 1, 1, 1, 0, 0, 0]], dtype=jnp.int32)

    out = backbone_forward(params, input_ids, attention_mask)
    logits = jax.block_until_ready(out['logits'])
    assert logits.shape == (B, NUM_LABELS)
    assert bool(jnp.all(jnp.isfinite(logits)))
    print("KERNEL_OK")
</pallas_src>

<mosaic_0001>
module attributes {stable_mosaic.version = 11 : i64} {
  func.func @fused_backbone_kernel(%arg0: i32, %arg1: memref<16x32xf32, #tpu.memory_space<vmem>>, %arg2: memref<16x16xf32, #tpu.memory_space<vmem>>, %arg3: memref<2x16xbf16, #tpu.memory_space<vmem>>, %arg4: memref<1x32xf32, #tpu.memory_space<vmem>>, %arg5: memref<1x32xf32, #tpu.memory_space<vmem>>, %arg6: memref<2x32x32xbf16, #tpu.memory_space<vmem>>, %arg7: memref<2x1x32xf32, #tpu.memory_space<vmem>>, %arg8: memref<2x32x32xbf16, #tpu.memory_space<vmem>>, %arg9: memref<2x1x32xf32, #tpu.memory_space<vmem>>, %arg10: memref<2x32x32xbf16, #tpu.memory_space<vmem>>, %arg11: memref<2x1x32xf32, #tpu.memory_space<vmem>>, %arg12: memref<2x32x32xbf16, #tpu.memory_space<vmem>>, %arg13: memref<2x1x32xf32, #tpu.memory_space<vmem>>, %arg14: memref<2x1x32xf32, #tpu.memory_space<vmem>>, %arg15: memref<2x1x32xf32, #tpu.memory_space<vmem>>, %arg16: memref<2x32x64xbf16, #tpu.memory_space<vmem>>, %arg17: memref<2x1x64xf32, #tpu.memory_space<vmem>>, %arg18: memref<2x64x32xbf16, #tpu.memory_space<vmem>>, %arg19: memref<2x1x32xf32, #tpu.memory_space<vmem>>, %arg20: memref<2x1x32xf32, #tpu.memory_space<vmem>>, %arg21: memref<2x1x32xf32, #tpu.memory_space<vmem>>, %arg22: memref<32x128xbf16, #tpu.memory_space<vmem>>, %arg23: memref<1x128xf32, #tpu.memory_space<vmem>>, %arg24: memref<2x128xf32, #tpu.memory_space<vmem>>) attributes {dimension_semantics = [#tpu.dimension_semantics<arbitrary>], iteration_bounds = array<i64: 1>, scalar_prefetch = 0 : i64, scratch_operands = 0 : i64, tpu.core_type = #tpu.core_type<tc>, window_params = [{pipeline_mode = #tpu.pipeline_mode<synchronous>, transform_indices = @transform_0, window_bounds = array<i64: 16, 32>}, {pipeline_mode = #tpu.pipeline_mode<synchronous>, transform_indices = @transform_1, window_bounds = array<i64: 16, 16>}, {pipeline_mode = #tpu.pipeline_mode<synchronous>, transform_indices = @transform_2, window_bounds = array<i64: 2, 16>}, {pipeline_mode = #tpu.pipeline_mode<synchronous>, transform_indices = @transform_3, window_bounds = array<i64: 1, 32>}, {pipeline_mode = #tpu.pipeline_mode<synchronous>, transform_indices = @transform_4, window_bounds = array<i64: 1, 32>}, {pipeline_mode = #tpu.pipeline_mode<synchronous>, transform_indices = @transform_5, window_bounds = array<i64: 2, 32, 32>}, {pipeline_mode = #tpu.pipeline_mode<synchronous>, transform_indices = @transform_6, window_bounds = array<i64: 2, 1, 32>}, {pipeline_mode = #tpu.pipeline_mode<synchronous>, transform_indices = @transform_7, window_bounds = array<i64: 2, 32, 32>}, {pipeline_mode = #tpu.pipeline_mode<synchronous>, transform_indices = @transform_8, window_bounds = array<i64: 2, 1, 32>}, {pipeline_mode = #tpu.pipeline_mode<synchronous>, transform_indices = @transform_9, window_bounds = array<i64: 2, 32, 32>}, {pipeline_mode = #tpu.pipeline_mode<synchronous>, transform_indices = @transform_10, window_bounds = array<i64: 2, 1, 32>}, {pipeline_mode = #tpu.pipeline_mode<synchronous>, transform_indices = @transform_11, window_bounds = array<i64: 2, 32, 32>}, {pipeline_mode = #tpu.pipeline_mode<synchronous>, transform_indices = @transform_12, window_bounds = array<i64: 2, 1, 32>}, {pipeline_mode = #tpu.pipeline_mode<synchronous>, transform_indices = @transform_13, window_bounds = array<i64: 2, 1, 32>}, {pipeline_mode = #tpu.pipeline_mode<synchronous>, transform_indices = @transform_14, window_bounds = array<i64: 2, 1, 32>}, {pipeline_mode = #tpu.pipeline_mode<synchronous>, transform_indices = @transform_15, window_bounds = array<i64: 2, 32, 64>}, {pipeline_mode = #tpu.pipeline_mode<synchronous>, transform_indices = @transform_16, window_bounds = array<i64: 2, 1, 64>}, {pipeline_mode = #tpu.pipeline_mode<synchronous>, transform_indices = @transform_17, window_bounds = array<i64: 2, 64, 32>}, {pipeline_mode = #tpu.pipeline_mode<synchronous>, transform_indices = @transform_18, window_bounds = array<i64: 2, 1, 32>}, {pipeline_mode = #tpu.pipeline_mode<synchronous>, transform_indices = @transform_19, window_bounds = array<i64: 2, 1, 32>}, {pipeline_mode = #tpu.pipeline_mode<synchronous>, transform_indices = @transform_20, window_bounds = array<i64: 2, 1, 32>}, {pipeline_mode = #tpu.pipeline_mode<synchronous>, transform_indices = @transform_21, window_bounds = array<i64: 32, 128>}, {pipeline_mode = #tpu.pipeline_mode<synchronous>, transform_indices = @transform_22, window_bounds = array<i64: 1, 128>}, {pipeline_mode = #tpu.pipeline_mode<synchronous>, transform_indices = @transform_23, window_bounds = array<i64: 2, 128>}]} {
    %c0 = arith.constant 0 : index
    %c0_0 = arith.constant 0 : index
    %0 = vector.load %arg1[%c0, %c0_0] : memref<16x32xf32, #tpu.memory_space<vmem>>, vector<16x32xf32>
    %c0_1 = arith.constant 0 : index
    %c0_2 = arith.constant 0 : index
    %1 = vector.load %arg4[%c0_1, %c0_2] : memref<1x32xf32, #tpu.memory_space<vmem>>, vector<1x32xf32>
    %c0_3 = arith.constant 0 : index
    %c0_4 = arith.constant 0 : index
    %2 = vector.load %arg5[%c0_3, %c0_4] : memref<1x32xf32, #tpu.memory_space<vmem>>, vector<1x32xf32>
    %cst = arith.constant dense<0.000000e+00> : vector<16xf32>
    %3 = vector.multi_reduction <add>, %0, %cst [1] : vector<16x32xf32> to vector<16xf32>
    %4 = vector.shape_cast %3 : vector<16xf32> to vector<16x1xf32>
    %cst_5 = arith.constant 3.200000e+01 : f32
    %5 = vector.broadcast %cst_5 : f32 to vector<16x1xf32>
    %6 = arith.divf %4, %5 : vector<16x1xf32>
    %7 = vector.broadcast %6 : vector<16x1xf32> to vector<16x32xf32>
    %8 = arith.subf %0, %7 : vector<16x32xf32>
    %9 = arith.mulf %8, %8 : vector<16x32xf32>
    %cst_6 = arith.constant dense<0.000000e+00> : vector<16xf32>
    %10 = vector.multi_reduction <add>, %9, %cst_6 [1] : vector<16x32xf32> to vector<16xf32>
    %11 = vector.shape_cast %10 : vector<16xf32> to vector<16x1xf32>
    %cst_7 = arith.constant 3.200000e+01 : f32
    %12 = vector.broadcast %cst_7 : f32 to vector<16x1xf32>
    %13 = arith.divf %11, %12 : vector<16x1xf32>
    %14 = vector.broadcast %6 : vector<16x1xf32> to vector<16x32xf32>
    %15 = arith.subf %0, %14 : vector<16x32xf32>
    %cst_8 = arith.constant 9.99999996E-13 : f32
    %16 = vector.broadcast %cst_8 : f32 to vector<16x1xf32>
    %17 = arith.addf %13, %16 : vector<16x1xf32>
    %18 = math.rsqrt %17 : vector<16x1xf32>
    %19 = vector.broadcast %18 : vector<16x1xf32> to vector<16x32xf32>
    %20 = arith.mulf %15, %19 : vector<16x32xf32>
    %21 = vector.broadcast %1 : vector<1x32xf32> to vector<16x32xf32>
    %22 = arith.mulf %20, %21 : vector<16x32xf32>
    %23 = vector.broadcast %2 : vector<1x32xf32> to vector<16x32xf32>
    %24 = arith.addf %22, %23 : vector<16x32xf32>
    %c0_9 = arith.constant 0 : index
    %c0_10 = arith.constant 0 : index
    %25 = vector.load %arg2[%c0_9, %c0_10] : memref<16x16xf32, #tpu.memory_space<vmem>>, vector<16x16xf32>
    %26 = tpu.iota {dimensions = array<i32: 1>} : vector<1x32xi32>
    %c0_i32 = arith.constant 0 : i32
    %27 = vector.broadcast %c0_i32 : i32 to vector<1x32xi32>
    %28 = arith.cmpi sge, %26, %27 : vector<1x32xi32>
    %c8_i32 = arith.constant 8 : i32
    %29 = vector.broadcast %c8_i32 : i32 to vector<1x32xi32>
    %30 = arith.cmpi slt, %26, %29 : vector<1x32xi32>
    %31 = arith.andi %28, %30 : vector<1x32xi1>
    %32 = arith.extui %31 : vector<1x32xi1> to vector<1x32xi32>
    %33 = arith.sitofp %32 : vector<1x32xi32> to vector<1x32xf32>
    %c8_i32_11 = arith.constant 8 : i32
    %34 = vector.broadcast %c8_i32_11 : i32 to vector<1x32xi32>
    %35 = arith.cmpi sge, %26, %34 : vector<1x32xi32>
    %c16_i32 = arith.constant 16 : i32
    %36 = vector.broadcast %c16_i32 : i32 to vector<1x32xi32>
    %37 = arith.cmpi slt, %26, %36 : vector<1x32xi32>
    %38 = arith.andi %35, %37 : vector<1x32xi1>
    %39 = arith.extui %38 : vector<1x32xi1> to vector<1x32xi32>
    %40 = arith.sitofp %39 : vector<1x32xi32> to vector<1x32xf32>
    %c16_i32_12 = arith.constant 16 : i32
    %41 = vector.broadcast %c16_i32_12 : i32 to vector<1x32xi32>
    %42 = arith.cmpi sge, %26, %41 : vector<1x32xi32>
    %c24_i32 = arith.constant 24 : i32
    %43 = vector.broadcast %c24_i32 : i32 to vector<1x32xi32>
    %44 = arith.cmpi slt, %26, %43 : vector<1x32xi32>
    %45 = arith.andi %42, %44 : vector<1x32xi1>
    %46 = arith.extui %45 : vector<1x32xi1> to vector<1x32xi32>
    %47 = arith.sitofp %46 : vector<1x32xi32> to vector<1x32xf32>
    %c24_i32_13 = arith.constant 24 : i32
    %48 = vector.broadcast %c24_i32_13 : i32 to vector<1x32xi32>
    %49 = arith.cmpi sge, %26, %48 : vector<1x32xi32>
    %c32_i32 = arith.constant 32 : i32
    %50 = vector.broadcast %c32_i32 : i32 to vector<1x32xi32>
    %51 = arith.cmpi slt, %26, %50 : vector<1x32xi32>
    %52 = arith.andi %49, %51 : vector<1x32xi1>
    %53 = arith.extui %52 : vector<1x32xi1> to vector<1x32xi32>
    %54 = arith.sitofp %53 : vector<1x32xi32> to vector<1x32xf32>
    %55 = arith.truncf %24 : vector<16x32xf32> to vector<16x32xbf16>
    %c0_14 = arith.constant 0 : index
    %c0_15 = arith.constant 0 : index
    %c0_16 = arith.constant 0 : index
    %56 = vector.load %arg6[%c0_14, %c0_15, %c0_16] : memref<2x32x32xbf16, #tpu.memory_space<vmem>>, vector<1x32x32xbf16>
    %57 = vector.shape_cast %56 : vector<1x32x32xbf16> to vector<32x32xbf16>
    %cst_17 = arith.constant dense<0.000000e+00> : vector<16x32xf32>
    %58 = tpu.matmul %55, %57, %cst_17 {dimension_numbers = #tpu.dot_dimension_numbers<[1], [0], [0], [1], [0, 0, 1, 1], [], []>} : vector<16x32xbf16>, vector<32x32xbf16>, vector<16x32xf32> -> vector<16x32xf32>
    %c0_18 = arith.constant 0 : index
    %c0_19 = arith.constant 0 : index
    %c0_20 = arith.constant 0 : index
    %59 = vector.load %arg7[%c0_18, %c0_19, %c0_20] : memref<2x1x32xf32, #tpu.memory_space<vmem>>, vector<1x1x32xf32>
    %60 = vector.shape_cast %59 : vector<1x1x32xf32> to vector<1x32xf32>
    %61 = vector.broadcast %60 : vector<1x32xf32> to vector<16x32xf32>
    %62 = arith.addf %58, %61 : vector<16x32xf32>
    %c0_21 = arith.constant 0 : index
    %c0_22 = arith.constant 0 : index
    %c0_23 = arith.constant 0 : index
    %63 = vector.load %arg8[%c0_21, %c0_22, %c0_23] : memref<2x32x32xbf16, #tpu.memory_space<vmem>>, vector<1x32x32xbf16>
    %64 = vector.shape_cast %63 : vector<1x32x32xbf16> to vector<32x32xbf16>
    %cst_24 = arith.constant dense<0.000000e+00> : vector<16x32xf32>
    %65 = tpu.matmul %55, %64, %cst_24 {dimension_numbers = #tpu.dot_dimension_numbers<[1], [0], [0], [1], [0, 0, 1, 1], [], []>} : vector<16x32xbf16>, vector<32x32xbf16>, vector<16x32xf32> -> vector<16x32xf32>
    %c0_25 = arith.constant 0 : index
    %c0_26 = arith.constant 0 : index
    %c0_27 = arith.constant 0 : index
    %66 = vector.load %arg9[%c0_25, %c0_26, %c0_27] : memref<2x1x32xf32, #tpu.memory_space<vmem>>, vector<1x1x32xf32>
    %67 = vector.shape_cast %66 : vector<1x1x32xf32> to vector<1x32xf32>
    %68 = vector.broadcast %67 : vector<1x32xf32> to vector<16x32xf32>
    %69 = arith.addf %65, %68 : vector<16x32xf32>
    %c0_28 = arith.constant 0 : index
    %c0_29 = arith.constant 0 : index
    %c0_30 = arith.constant 0 : index
    %70 = vector.load %arg10[%c0_28, %c0_29, %c0_30] : memref<2x32x32xbf16, #tpu.memory_space<vmem>>, vector<1x32x32xbf16>
    %71 = vector.shape_cast %70 : vector<1x32x32xbf16> to vector<32x32xbf16>
    %cst_31 = arith.constant dense<0.000000e+00> : vector<16x32xf32>
    %72 = tpu.matmul %55, %71, %cst_31 {dimension_numbers = #tpu.dot_dimension_numbers<[1], [0], [0], [1], [0, 0, 1, 1], [], []>} : vector<16x32xbf16>, vector<32x32xbf16>, vector<16x32xf32> -> vector<16x32xf32>
    %c0_32 = arith.constant 0 : index
    %c0_33 = arith.constant 0 : index
    %c0_34 = arith.constant 0 : index
    %73 = vector.load %arg11[%c0_32, %c0_33, %c0_34] : memref<2x1x32xf32, #tpu.memory_space<vmem>>, vector<1x1x32xf32>
    %74 = vector.shape_cast %73 : vector<1x1x32xf32> to vector<1x32xf32>
    %75 = vector.broadcast %74 : vector<1x32xf32> to vector<16x32xf32>
    %76 = arith.addf %72, %75 : vector<16x32xf32>
    %cst_35 = arith.constant 0.353553385 : f32
    %77 = vector.broadcast %cst_35 : f32 to vector<16x32xf32>
    %78 = arith.mulf %62, %77 : vector<16x32xf32>
    %79 = arith.truncf %69 : vector<16x32xf32> to vector<16x32xbf16>
    %cst_36 = arith.constant 0.000000e+00 : f32
    %80 = vector.broadcast %cst_36 : f32 to vector<16x32xf32>
    %81 = vector.broadcast %33 : vector<1x32xf32> to vector<16x32xf32>
    %82 = arith.mulf %78, %81 : vector<16x32xf32>
    %83 = arith.truncf %82 : vector<16x32xf32> to vector<16x32xbf16>
    "tpu.trace_start"() <{level = 10 : i32, message = "qd,kd->qk"}> : () -> ()
    %cst_37 = arith.constant dense<0.000000e+00> : vector<16x16xf32>
    %84 = tpu.matmul %83, %79, %cst_37 {dimension_numbers = #tpu.dot_dimension_numbers<[1], [1], [0], [0], [0, 0, 1, 0], [], []>} : vector<16x32xbf16>, vector<16x32xbf16>, vector<16x16xf32> -> vector<16x16xf32>
    "tpu.trace_stop"() : () -> ()
    %85 = arith.addf %84, %25 : vector<16x16xf32>
    %cst_38 = arith.constant dense<0xFF800000> : vector<16xf32>
    %86 = vector.multi_reduction <maximumf>, %85, %cst_38 [1] : vector<16x16xf32> to vector<16xf32>
    %87 = vector.shape_cast %86 : vector<16xf32> to vector<16x1xf32>
    %88 = vector.broadcast %87 : vector<16x1xf32> to vector<16x16xf32>
    %89 = arith.subf %85, %88 : vector<16x16xf32>
    %90 = math.exp %89 : vector<16x16xf32>
    %cst_39 = arith.constant dense<0.000000e+00> : vector<16xf32>
    %91 = vector.multi_reduction <add>, %90, %cst_39 [1] : vector<16x16xf32> to vector<16xf32>
    %92 = vector.shape_cast %91 : vector<16xf32> to vector<16x1xf32>
    %93 = tpu.reciprocal %92 {approx = true} : vector<16x1xf32> -> vector<16x1xf32>
    %94 = vector.broadcast %93 : vector<16x1xf32> to vector<16x16xf32>
    %95 = arith.mulf %90, %94 : vector<16x16xf32>
    %96 = vector.broadcast %33 : vector<1x32xf32> to vector<16x32xf32>
    %97 = arith.mulf %76, %96 : vector<16x32xf32>
    %98 = arith.truncf %97 : vector<16x32xf32> to vector<16x32xbf16>
    %99 = arith.truncf %95 : vector<16x16xf32> to vector<16x16xbf16>
    %cst_40 = arith.constant dense<0.000000e+00> : vector<16x32xf32>
    %100 = tpu.matmul %99, %98, %cst_40 {dimension_numbers = #tpu.dot_dimension_numbers<[1], [0], [0], [1], [0, 0, 1, 1], [], []>} : vector<16x16xbf16>, vector<16x32xbf16>, vector<16x32xf32> -> vector<16x32xf32>
    %101 = arith.addf %80, %100 : vector<16x32xf32>
    %102 = vector.broadcast %40 : vector<1x32xf32> to vector<16x32xf32>
    %103 = arith.mulf %78, %102 : vector<16x32xf32>
    %104 = arith.truncf %103 : vector<16x32xf32> to vector<16x32xbf16>
    "tpu.trace_start"() <{level = 10 : i32, message = "qd,kd->qk"}> : () -> ()
    %cst_41 = arith.constant dense<0.000000e+00> : vector<16x16xf32>
    %105 = tpu.matmul %104, %79, %cst_41 {dimension_numbers = #tpu.dot_dimension_numbers<[1], [1], [0], [0], [0, 0, 1, 0], [], []>} : vector<16x32xbf16>, vector<16x32xbf16>, vector<16x16xf32> -> vector<16x16xf32>
    "tpu.trace_stop"() : () -> ()
    %106 = arith.addf %105, %25 : vector<16x16xf32>
    %cst_42 = arith.constant dense<0xFF800000> : vector<16xf32>
    %107 = vector.multi_reduction <maximumf>, %106, %cst_42 [1] : vector<16x16xf32> to vector<16xf32>
    %108 = vector.shape_cast %107 : vector<16xf32> to vector<16x1xf32>
    %109 = vector.broadcast %108 : vector<16x1xf32> to vector<16x16xf32>
    %110 = arith.subf %106, %109 : vector<16x16xf32>
    %111 = math.exp %110 : vector<16x16xf32>
    %cst_43 = arith.constant dense<0.000000e+00> : vector<16xf32>
    %112 = vector.multi_reduction <add>, %111, %cst_43 [1] : vector<16x16xf32> to vector<16xf32>
    %113 = vector.shape_cast %112 : vector<16xf32> to vector<16x1xf32>
    %114 = tpu.reciprocal %113 {approx = true} : vector<16x1xf32> -> vector<16x1xf32>
    %115 = vector.broadcast %114 : vector<16x1xf32> to vector<16x16xf32>
    %116 = arith.mulf %111, %115 : vector<16x16xf32>
    %117 = vector.broadcast %40 : vector<1x32xf32> to vector<16x32xf32>
    %118 = arith.mulf %76, %117 : vector<16x32xf32>
    %119 = arith.truncf %118 : vector<16x32xf32> to vector<16x32xbf16>
    %120 = arith.truncf %116 : vector<16x16xf32> to vector<16x16xbf16>
    %cst_44 = arith.constant dense<0.000000e+00> : vector<16x32xf32>
    %121 = tpu.matmul %120, %119, %cst_44 {dimension_numbers = #tpu.dot_dimension_numbers<[1], [0], [0], [1], [0, 0, 1, 1], [], []>} : vector<16x16xbf16>, vector<16x32xbf16>, vector<16x32xf32> -> vector<16x32xf32>
    %122 = arith.addf %101, %121 : vector<16x32xf32>
    %123 = vector.broadcast %47 : vector<1x32xf32> to vector<16x32xf32>
    %124 = arith.mulf %78, %123 : vector<16x32xf32>
    %125 = arith.truncf %124 : vector<16x32xf32> to vector<16x32xbf16>
    "tpu.trace_start"() <{level = 10 : i32, message = "qd,kd->qk"}> : () -> ()
    %cst_45 = arith.constant dense<0.000000e+00> : vector<16x16xf32>
    %126 = tpu.matmul %125, %79, %cst_45 {dimension_numbers = #tpu.dot_dimension_numbers<[1], [1], [0], [0], [0, 0, 1, 0], [], []>} : vector<16x32xbf16>, vector<16x32xbf16>, vector<16x16xf32> -> vector<16x16xf32>
    "tpu.trace_stop"() : () -> ()
    %127 = arith.addf %126, %25 : vector<16x16xf32>
    %cst_46 = arith.constant dense<0xFF800000> : vector<16xf32>
    %128 = vector.multi_reduction <maximumf>, %127, %cst_46 [1] : vector<16x16xf32> to vector<16xf32>
    %129 = vector.shape_cast %128 : vector<16xf32> to vector<16x1xf32>
    %130 = vector.broadcast %129 : vector<16x1xf32> to vector<16x16xf32>
    %131 = arith.subf %127, %130 : vector<16x16xf32>
    %132 = math.exp %131 : vector<16x16xf32>
    %cst_47 = arith.constant dense<0.000000e+00> : vector<16xf32>
    %133 = vector.multi_reduction <add>, %132, %cst_47 [1] : vector<16x16xf32> to vector<16xf32>
    %134 = vector.shape_cast %133 : vector<16xf32> to vector<16x1xf32>
    %135 = tpu.reciprocal %134 {approx = true} : vector<16x1xf32> -> vector<16x1xf32>
    %136 = vector.broadcast %135 : vector<16x1xf32> to vector<16x16xf32>
    %137 = arith.mulf %132, %136 : vector<16x16xf32>
    %138 = vector.broadcast %47 : vector<1x32xf32> to vector<16x32xf32>
    %139 = arith.mulf %76, %138 : vector<16x32xf32>
    %140 = arith.truncf %139 : vector<16x32xf32> to vector<16x32xbf16>
    %141 = arith.truncf %137 : vector<16x16xf32> to vector<16x16xbf16>
    %cst_48 = arith.constant dense<0.000000e+00> : vector<16x32xf32>
    %142 = tpu.matmul %141, %140, %cst_48 {dimension_numbers = #tpu.dot_dimension_numbers<[1], [0], [0], [1], [0, 0, 1, 1], [], []>} : vector<16x16xbf16>, vector<16x32xbf16>, vector<16x32xf32> -> vector<16x32xf32>
    %143 = arith.addf %122, %142 : vector<16x32xf32>
    %144 = vector.broadcast %54 : vector<1x32xf32> to vector<16x32xf32>
    %145 = arith.mulf %78, %144 : vector<16x32xf32>
    %146 = arith.truncf %145 : vector<16x32xf32> to vector<16x32xbf16>
    "tpu.trace_start"() <{level = 10 : i32, message = "qd,kd->qk"}> : () -> ()
    %cst_49 = arith.constant dense<0.000000e+00> : vector<16x16xf32>
    %147 = tpu.matmul %146, %79, %cst_49 {dimension_numbers = #tpu.dot_dimension_numbers<[1], [1], [0], [0], [0, 0, 1, 0], [], []>} : vector<16x32xbf16>, vector<16x32xbf16>, vector<16x16xf32> -> vector<16x16xf32>
    "tpu.trace_stop"() : () -> ()
    %148 = arith.addf %147, %25 : vector<16x16xf32>
    %cst_50 = arith.constant dense<0xFF800000> : vector<16xf32>
    %149 = vector.multi_reduction <maximumf>, %148, %cst_50 [1] : vector<16x16xf32> to vector<16xf32>
    %150 = vector.shape_cast %149 : vector<16xf32> to vector<16x1xf32>
    %151 = vector.broadcast %150 : vector<16x1xf32> to vector<16x16xf32>
    %152 = arith.subf %148, %151 : vector<16x16xf32>
    %153 = math.exp %152 : vector<16x16xf32>
    %cst_51 = arith.constant dense<0.000000e+00> : vector<16xf32>
    %154 = vector.multi_reduction <add>, %153, %cst_51 [1] : vector<16x16xf32> to vector<16xf32>
    %155 = vector.shape_cast %154 : vector<16xf32> to vector<16x1xf32>
    %156 = tpu.reciprocal %155 {approx = true} : vector<16x1xf32> -> vector<16x1xf32>
    %157 = vector.broadcast %156 : vector<16x1xf32> to vector<16x16xf32>
    %158 = arith.mulf %153, %157 : vector<16x16xf32>
    %159 = vector.broadcast %54 : vector<1x32xf32> to vector<16x32xf32>
    %160 = arith.mulf %76, %159 : vector<16x32xf32>
    %161 = arith.truncf %160 : vector<16x32xf32> to vector<16x32xbf16>
    %162 = arith.truncf %158 : vector<16x16xf32> to vector<16x16xbf16>
    %cst_52 = arith.constant dense<0.000000e+00> : vector<16x32xf32>
    %163 = tpu.matmul %162, %161, %cst_52 {dimension_numbers = #tpu.dot_dimension_numbers<[1], [0], [0], [1], [0, 0, 1, 1], [], []>} : vector<16x16xbf16>, vector<16x32xbf16>, vector<16x32xf32> -> vector<16x32xf32>
    %164 = arith.addf %143, %163 : vector<16x32xf32>
    %165 = arith.truncf %164 : vector<16x32xf32> to vector<16x32xbf16>
    %c0_53 = arith.constant 0 : index
    %c0_54 = arith.constant 0 : index
    %c0_55 = arith.constant 0 : index
    %166 = vector.load %arg12[%c0_53, %c0_54, %c0_55] : memref<2x32x32xbf16, #tpu.memory_space<vmem>>, vector<1x32x32xbf16>
    %167 = vector.shape_cast %166 : vector<1x32x32xbf16> to vector<32x32xbf16>
    %cst_56 = arith.constant dense<0.000000e+00> : vector<16x32xf32>
    %168 = tpu.matmul %165, %167, %cst_56 {dimension_numbers = #tpu.dot_dimension_numbers<[1], [0], [0], [1], [0, 0, 1, 1], [], []>} : vector<16x32xbf16>, vector<32x32xbf16>, vector<16x32xf32> -> vector<16x32xf32>
    %c0_57 = arith.constant 0 : index
    %c0_58 = arith.constant 0 : index
    %c0_59 = arith.constant 0 : index
    %169 = vector.load %arg13[%c0_57, %c0_58, %c0_59] : memref<2x1x32xf32, #tpu.memory_space<vmem>>, vector<1x1x32xf32>
    %170 = vector.shape_cast %169 : vector<1x1x32xf32> to vector<1x32xf32>
    %171 = vector.broadcast %170 : vector<1x32xf32> to vector<16x32xf32>
    %172 = arith.addf %168, %171 : vector<16x32xf32>
    %173 = arith.addf %24, %172 : vector<16x32xf32>
    %c0_60 = arith.constant 0 : index
    %c0_61 = arith.constant 0 : index
    %c0_62 = arith.constant 0 : index
    %174 = vector.load %arg14[%c0_60, %c0_61, %c0_62] : memref<2x1x32xf32, #tpu.memory_space<vmem>>, vector<1x1x32xf32>
    %175 = vector.shape_cast %174 : vector<1x1x32xf32> to vector<1x32xf32>
    %c0_63 = arith.constant 0 : index
    %c0_64 = arith.constant 0 : index
    %c0_65 = arith.constant 0 : index
    %176 = vector.load %arg15[%c0_63, %c0_64, %c0_65] : memref<2x1x32xf32, #tpu.memory_space<vmem>>, vector<1x1x32xf32>
    %177 = vector.shape_cast %176 : vector<1x1x32xf32> to vector<1x32xf32>
    %cst_66 = arith.constant dense<0.000000e+00> : vector<16xf32>
    %178 = vector.multi_reduction <add>, %173, %cst_66 [1] : vector<16x32xf32> to vector<16xf32>
    %179 = vector.shape_cast %178 : vector<16xf32> to vector<16x1xf32>
    %cst_67 = arith.constant 3.200000e+01 : f32
    %180 = vector.broadcast %cst_67 : f32 to vector<16x1xf32>
    %181 = arith.divf %179, %180 : vector<16x1xf32>
    %182 = vector.broadcast %181 : vector<16x1xf32> to vector<16x32xf32>
    %183 = arith.subf %173, %182 : vector<16x32xf32>
    %184 = arith.mulf %183, %183 : vector<16x32xf32>
    %cst_68 = arith.constant dense<0.000000e+00> : vector<16xf32>
    %185 = vector.multi_reduction <add>, %184, %cst_68 [1] : vector<16x32xf32> to vector<16xf32>
    %186 = vector.shape_cast %185 : vector<16xf32> to vector<16x1xf32>
    %cst_69 = arith.constant 3.200000e+01 : f32
    %187 = vector.broadcast %cst_69 : f32 to vector<16x1xf32>
    %188 = arith.divf %186, %187 : vector<16x1xf32>
    %189 = vector.broadcast %181 : vector<16x1xf32> to vector<16x32xf32>
    %190 = arith.subf %173, %189 : vector<16x32xf32>
    %cst_70 = arith.constant 9.99999996E-13 : f32
    %191 = vector.broadcast %cst_70 : f32 to vector<16x1xf32>
    %192 = arith.addf %188, %191 : vector<16x1xf32>
    %193 = math.rsqrt %192 : vector<16x1xf32>
    %194 = vector.broadcast %193 : vector<16x1xf32> to vector<16x32xf32>
    %195 = arith.mulf %190, %194 : vector<16x32xf32>
    %196 = vector.broadcast %175 : vector<1x32xf32> to vector<16x32xf32>
    %197 = arith.mulf %195, %196 : vector<16x32xf32>
    %198 = vector.broadcast %177 : vector<1x32xf32> to vector<16x32xf32>
    %199 = arith.addf %197, %198 : vector<16x32xf32>
    %200 = arith.truncf %199 : vector<16x32xf32> to vector<16x32xbf16>
    %c0_71 = arith.constant 0 : index
    %c0_72 = arith.constant 0 : index
    %c0_73 = arith.constant 0 : index
    %201 = vector.load %arg16[%c0_71, %c0_72, %c0_73] : memref<2x32x64xbf16, #tpu.memory_space<vmem>>, vector<1x32x64xbf16>
    %202 = vector.shape_cast %201 : vector<1x32x64xbf16> to vector<32x64xbf16>
    %cst_74 = arith.constant dense<0.000000e+00> : vector<16x64xf32>
    %203 = tpu.matmul %200, %202, %cst_74 {dimension_numbers = #tpu.dot_dimension_numbers<[1], [0], [0], [1], [0, 0, 1, 1], [], []>} : vector<16x32xbf16>, vector<32x64xbf16>, vector<16x64xf32> -> vector<16x64xf32>
    %c0_75 = arith.constant 0 : index
    %c0_76 = arith.constant 0 : index
    %c0_77 = arith.constant 0 : index
    %204 = vector.load %arg17[%c0_75, %c0_76, %c0_77] : memref<2x1x64xf32, #tpu.memory_space<vmem>>, vector<1x1x64xf32>
    %205 = vector.shape_cast %204 : vector<1x1x64xf32> to vector<1x64xf32>
    %206 = vector.broadcast %205 : vector<1x64xf32> to vector<16x64xf32>
    %207 = arith.addf %203, %206 : vector<16x64xf32>
    %cst_78 = arith.constant 5.000000e-01 : f32
    %208 = vector.broadcast %cst_78 : f32 to vector<16x64xf32>
    %209 = arith.mulf %208, %207 : vector<16x64xf32>
    %cst_79 = arith.constant 4.471500e-02 : f32
    %210 = vector.broadcast %cst_79 : f32 to vector<16x64xf32>
    %211 = arith.mulf %210, %207 : vector<16x64xf32>
    %212 = arith.mulf %211, %207 : vector<16x64xf32>
    %213 = arith.mulf %212, %207 : vector<16x64xf32>
    %214 = arith.addf %207, %213 : vector<16x64xf32>
    %cst_80 = arith.constant 0.797884583 : f32
    %215 = vector.broadcast %cst_80 : f32 to vector<16x64xf32>
    %216 = arith.mulf %215, %214 : vector<16x64xf32>
    %217 = math.tanh %216 : vector<16x64xf32>
    %cst_81 = arith.constant 1.000000e+00 : f32
    %218 = vector.broadcast %cst_81 : f32 to vector<16x64xf32>
    %219 = arith.addf %218, %217 : vector<16x64xf32>
    %220 = arith.mulf %209, %219 : vector<16x64xf32>
    %221 = arith.truncf %220 : vector<16x64xf32> to vector<16x64xbf16>
    %c0_82 = arith.constant 0 : index
    %c0_83 = arith.constant 0 : index
    %c0_84 = arith.constant 0 : index
    %222 = vector.load %arg18[%c0_82, %c0_83, %c0_84] : memref<2x64x32xbf16, #tpu.memory_space<vmem>>, vector<1x64x32xbf16>
    %223 = vector.shape_cast %222 : vector<1x64x32xbf16> to vector<64x32xbf16>
    %cst_85 = arith.constant dense<0.000000e+00> : vector<16x32xf32>
    %224 = tpu.matmul %221, %223, %cst_85 {dimension_numbers = #tpu.dot_dimension_numbers<[1], [0], [0], [1], [0, 0, 1, 1], [], []>} : vector<16x64xbf16>, vector<64x32xbf16>, vector<16x32xf32> -> vector<16x32xf32>
    %c0_86 = arith.constant 0 : index
    %c0_87 = arith.constant 0 : index
    %c0_88 = arith.constant 0 : index
    %225 = vector.load %arg19[%c0_86, %c0_87, %c0_88] : memref<2x1x32xf32, #tpu.memory_space<vmem>>, vector<1x1x32xf32>
    %226 = vector.shape_cast %225 : vector<1x1x32xf32> to vector<1x32xf32>
    %227 = vector.broadcast %226 : vector<1x32xf32> to vector<16x32xf32>
    %228 = arith.addf %224, %227 : vector<16x32xf32>
    %229 = arith.addf %199, %228 : vector<16x32xf32>
    %c0_89 = arith.constant 0 : index
    %c0_90 = arith.constant 0 : index
    %c0_91 = arith.constant 0 : index
    %230 = vector.load %arg20[%c0_89, %c0_90, %c0_91] : memref<2x1x32xf32, #tpu.memory_space<vmem>>, vector<1x1x32xf32>
    %231 = vector.shape_cast %230 : vector<1x1x32xf32> to vector<1x32xf32>
    %c0_92 = arith.constant 0 : index
    %c0_93 = arith.constant 0 : index
    %c0_94 = arith.constant 0 : index
    %232 = vector.load %arg21[%c0_92, %c0_93, %c0_94] : memref<2x1x32xf32, #tpu.memory_space<vmem>>, vector<1x1x32xf32>
    %233 = vector.shape_cast %232 : vector<1x1x32xf32> to vector<1x32xf32>
    %cst_95 = arith.constant dense<0.000000e+00> : vector<16xf32>
    %234 = vector.multi_reduction <add>, %229, %cst_95 [1] : vector<16x32xf32> to vector<16xf32>
    %235 = vector.shape_cast %234 : vector<16xf32> to vector<16x1xf32>
    %cst_96 = arith.constant 3.200000e+01 : f32
    %236 = vector.broadcast %cst_96 : f32 to vector<16x1xf32>
    %237 = arith.divf %235, %236 : vector<16x1xf32>
    %238 = vector.broadcast %237 : vector<16x1xf32> to vector<16x32xf32>
    %239 = arith.subf %229, %238 : vector<16x32xf32>
    %240 = arith.mulf %239, %239 : vector<16x32xf32>
    %cst_97 = arith.constant dense<0.000000e+00> : vector<16xf32>
    %241 = vector.multi_reduction <add>, %240, %cst_97 [1] : vector<16x32xf32> to vector<16xf32>
    %242 = vector.shape_cast %241 : vector<16xf32> to vector<16x1xf32>
    %cst_98 = arith.constant 3.200000e+01 : f32
    %243 = vector.broadcast %cst_98 : f32 to vector<16x1xf32>
    %244 = arith.divf %242, %243 : vector<16x1xf32>
    %245 = vector.broadcast %237 : vector<16x1xf32> to vector<16x32xf32>
    %246 = arith.subf %229, %245 : vector<16x32xf32>
    %cst_99 = arith.constant 9.99999996E-13 : f32
    %247 = vector.broadcast %cst_99 : f32 to vector<16x1xf32>
    %248 = arith.addf %244, %247 : vector<16x1xf32>
    %249 = math.rsqrt %248 : vector<16x1xf32>
    %250 = vector.broadcast %249 : vector<16x1xf32> to vector<16x32xf32>
    %251 = arith.mulf %246, %250 : vector<16x32xf32>
    %252 = vector.broadcast %231 : vector<1x32xf32> to vector<16x32xf32>
    %253 = arith.mulf %251, %252 : vector<16x32xf32>
    %254 = vector.broadcast %233 : vector<1x32xf32> to vector<16x32xf32>
    %255 = arith.addf %253, %254 : vector<16x32xf32>
    %256 = arith.truncf %255 : vector<16x32xf32> to vector<16x32xbf16>
    %c1 = arith.constant 1 : index
    %c0_100 = arith.constant 0 : index
    %c0_101 = arith.constant 0 : index
    %257 = vector.load %arg6[%c1, %c0_100, %c0_101] : memref<2x32x32xbf16, #tpu.memory_space<vmem>>, vector<1x32x32xbf16>
    %258 = vector.shape_cast %257 : vector<1x32x32xbf16> to vector<32x32xbf16>
    %cst_102 = arith.constant dense<0.000000e+00> : vector<16x32xf32>
    %259 = tpu.matmul %256, %258, %cst_102 {dimension_numbers = #tpu.dot_dimension_numbers<[1], [0], [0], [1], [0, 0, 1, 1], [], []>} : vector<16x32xbf16>, vector<32x32xbf16>, vector<16x32xf32> -> vector<16x32xf32>
    %c1_103 = arith.constant 1 : index
    %c0_104 = arith.constant 0 : index
    %c0_105 = arith.constant 0 : index
    %260 = vector.load %arg7[%c1_103, %c0_104, %c0_105] : memref<2x1x32xf32, #tpu.memory_space<vmem>>, vector<1x1x32xf32>
    %261 = vector.shape_cast %260 : vector<1x1x32xf32> to vector<1x32xf32>
    %262 = vector.broadcast %261 : vector<1x32xf32> to vector<16x32xf32>
    %263 = arith.addf %259, %262 : vector<16x32xf32>
    %c1_106 = arith.constant 1 : index
    %c0_107 = arith.constant 0 : index
    %c0_108 = arith.constant 0 : index
    %264 = vector.load %arg8[%c1_106, %c0_107, %c0_108] : memref<2x32x32xbf16, #tpu.memory_space<vmem>>, vector<1x32x32xbf16>
    %265 = vector.shape_cast %264 : vector<1x32x32xbf16> to vector<32x32xbf16>
    %cst_109 = arith.constant dense<0.000000e+00> : vector<16x32xf32>
    %266 = tpu.matmul %256, %265, %cst_109 {dimension_numbers = #tpu.dot_dimension_numbers<[1], [0], [0], [1], [0, 0, 1, 1], [], []>} : vector<16x32xbf16>, vector<32x32xbf16>, vector<16x32xf32> -> vector<16x32xf32>
    %c1_110 = arith.constant 1 : index
    %c0_111 = arith.constant 0 : index
    %c0_112 = arith.constant 0 : index
    %267 = vector.load %arg9[%c1_110, %c0_111, %c0_112] : memref<2x1x32xf32, #tpu.memory_space<vmem>>, vector<1x1x32xf32>
    %268 = vector.shape_cast %267 : vector<1x1x32xf32> to vector<1x32xf32>
    %269 = vector.broadcast %268 : vector<1x32xf32> to vector<16x32xf32>
    %270 = arith.addf %266, %269 : vector<16x32xf32>
    %c1_113 = arith.constant 1 : index
    %c0_114 = arith.constant 0 : index
    %c0_115 = arith.constant 0 : index
    %271 = vector.load %arg10[%c1_113, %c0_114, %c0_115] : memref<2x32x32xbf16, #tpu.memory_space<vmem>>, vector<1x32x32xbf16>
    %272 = vector.shape_cast %271 : vector<1x32x32xbf16> to vector<32x32xbf16>
    %cst_116 = arith.constant dense<0.000000e+00> : vector<16x32xf32>
    %273 = tpu.matmul %256, %272, %cst_116 {dimension_numbers = #tpu.dot_dimension_numbers<[1], [0], [0], [1], [0, 0, 1, 1], [], []>} : vector<16x32xbf16>, vector<32x32xbf16>, vector<16x32xf32> -> vector<16x32xf32>
    %c1_117 = arith.constant 1 : index
    %c0_118 = arith.constant 0 : index
    %c0_119 = arith.constant 0 : index
    %274 = vector.load %arg11[%c1_117, %c0_118, %c0_119] : memref<2x1x32xf32, #tpu.memory_space<vmem>>, vector<1x1x32xf32>
    %275 = vector.shape_cast %274 : vector<1x1x32xf32> to vector<1x32xf32>
    %276 = vector.broadcast %275 : vector<1x32xf32> to vector<16x32xf32>
    %277 = arith.addf %273, %276 : vector<16x32xf32>
    %cst_120 = arith.constant 0.353553385 : f32
    %278 = vector.broadcast %cst_120 : f32 to vector<16x32xf32>
    %279 = arith.mulf %263, %278 : vector<16x32xf32>
    %280 = arith.truncf %270 : vector<16x32xf32> to vector<16x32xbf16>
    %cst_121 = arith.constant 0.000000e+00 : f32
    %281 = vector.broadcast %cst_121 : f32 to vector<16x32xf32>
    %282 = vector.broadcast %33 : vector<1x32xf32> to vector<16x32xf32>
    %283 = arith.mulf %279, %282 : vector<16x32xf32>
    %284 = arith.truncf %283 : vector<16x32xf32> to vector<16x32xbf16>
    "tpu.trace_start"() <{level = 10 : i32, message = "qd,kd->qk"}> : () -> ()
    %cst_122 = arith.constant dense<0.000000e+00> : vector<16x16xf32>
    %285 = tpu.matmul %284, %280, %cst_122 {dimension_numbers = #tpu.dot_dimension_numbers<[1], [1], [0], [0], [0, 0, 1, 0], [], []>} : vector<16x32xbf16>, vector<16x32xbf16>, vector<16x16xf32> -> vector<16x16xf32>
    "tpu.trace_stop"() : () -> ()
    %286 = arith.addf %285, %25 : vector<16x16xf32>
    %cst_123 = arith.constant dense<0xFF800000> : vector<16xf32>
    %287 = vector.multi_reduction <maximumf>, %286, %cst_123 [1] : vector<16x16xf32> to vector<16xf32>
    %288 = vector.shape_cast %287 : vector<16xf32> to vector<16x1xf32>
    %289 = vector.broadcast %288 : vector<16x1xf32> to vector<16x16xf32>
    %290 = arith.subf %286, %289 : vector<16x16xf32>
    %291 = math.exp %290 : vector<16x16xf32>
    %cst_124 = arith.constant dense<0.000000e+00> : vector<16xf32>
    %292 = vector.multi_reduction <add>, %291, %cst_124 [1] : vector<16x16xf32> to vector<16xf32>
    %293 = vector.shape_cast %292 : vector<16xf32> to vector<16x1xf32>
    %294 = tpu.reciprocal %293 {approx = true} : vector<16x1xf32> -> vector<16x1xf32>
    %295 = vector.broadcast %294 : vector<16x1xf32> to vector<16x16xf32>
    %296 = arith.mulf %291, %295 : vector<16x16xf32>
    %297 = vector.broadcast %33 : vector<1x32xf32> to vector<16x32xf32>
    %298 = arith.mulf %277, %297 : vector<16x32xf32>
    %299 = arith.truncf %298 : vector<16x32xf32> to vector<16x32xbf16>
    %300 = arith.truncf %296 : vector<16x16xf32> to vector<16x16xbf16>
    %cst_125 = arith.constant dense<0.000000e+00> : vector<16x32xf32>
    %301 = tpu.matmul %300, %299, %cst_125 {dimension_numbers = #tpu.dot_dimension_numbers<[1], [0], [0], [1], [0, 0, 1, 1], [], []>} : vector<16x16xbf16>, vector<16x32xbf16>, vector<16x32xf32> -> vector<16x32xf32>
    %302 = arith.addf %281, %301 : vector<16x32xf32>
    %303 = vector.broadcast %40 : vector<1x32xf32> to vector<16x32xf32>
    %304 = arith.mulf %279, %303 : vector<16x32xf32>
    %305 = arith.truncf %304 : vector<16x32xf32> to vector<16x32xbf16>
    "tpu.trace_start"() <{level = 10 : i32, message = "qd,kd->qk"}> : () -> ()
    %cst_126 = arith.constant dense<0.000000e+00> : vector<16x16xf32>
    %306 = tpu.matmul %305, %280, %cst_126 {dimension_numbers = #tpu.dot_dimension_numbers<[1], [1], [0], [0], [0, 0, 1, 0], [], []>} : vector<16x32xbf16>, vector<16x32xbf16>, vector<16x16xf32> -> vector<16x16xf32>
    "tpu.trace_stop"() : () -> ()
    %307 = arith.addf %306, %25 : vector<16x16xf32>
    %cst_127 = arith.constant dense<0xFF800000> : vector<16xf32>
    %308 = vector.multi_reduction <maximumf>, %307, %cst_127 [1] : vector<16x16xf32> to vector<16xf32>
    %309 = vector.shape_cast %308 : vector<16xf32> to vector<16x1xf32>
    %310 = vector.broadcast %309 : vector<16x1xf32> to vector<16x16xf32>
    %311 = arith.subf %307, %310 : vector<16x16xf32>
    %312 = math.exp %311 : vector<16x16xf32>
    %cst_128 = arith.constant dense<0.000000e+00> : vector<16xf32>
    %313 = vector.multi_reduction <add>, %312, %cst_128 [1] : vector<16x16xf32> to vector<16xf32>
    %314 = vector.shape_cast %313 : vector<16xf32> to vector<16x1xf32>
    %315 = tpu.reciprocal %314 {approx = true} : vector<16x1xf32> -> vector<16x1xf32>
    %316 = vector.broadcast %315 : vector<16x1xf32> to vector<16x16xf32>
    %317 = arith.mulf %312, %316 : vector<16x16xf32>
    %318 = vector.broadcast %40 : vector<1x32xf32> to vector<16x32xf32>
    %319 = arith.mulf %277, %318 : vector<16x32xf32>
    %320 = arith.truncf %319 : vector<16x32xf32> to vector<16x32xbf16>
    %321 = arith.truncf %317 : vector<16x16xf32> to vector<16x16xbf16>
    %cst_129 = arith.constant dense<0.000000e+00> : vector<16x32xf32>
    %322 = tpu.matmul %321, %320, %cst_129 {dimension_numbers = #tpu.dot_dimension_numbers<[1], [0], [0], [1], [0, 0, 1, 1], [], []>} : vector<16x16xbf16>, vector<16x32xbf16>, vector<16x32xf32> -> vector<16x32xf32>
    %323 = arith.addf %302, %322 : vector<16x32xf32>
    %324 = vector.broadcast %47 : vector<1x32xf32> to vector<16x32xf32>
    %325 = arith.mulf %279, %324 : vector<16x32xf32>
    %326 = arith.truncf %325 : vector<16x32xf32> to vector<16x32xbf16>
    "tpu.trace_start"() <{level = 10 : i32, message = "qd,kd->qk"}> : () -> ()
    %cst_130 = arith.constant dense<0.000000e+00> : vector<16x16xf32>
    %327 = tpu.matmul %326, %280, %cst_130 {dimension_numbers = #tpu.dot_dimension_numbers<[1], [1], [0], [0], [0, 0, 1, 0], [], []>} : vector<16x32xbf16>, vector<16x32xbf16>, vector<16x16xf32> -> vector<16x16xf32>
    "tpu.trace_stop"() : () -> ()
    %328 = arith.addf %327, %25 : vector<16x16xf32>
    %cst_131 = arith.constant dense<0xFF800000> : vector<16xf32>
    %329 = vector.multi_reduction <maximumf>, %328, %cst_131 [1] : vector<16x16xf32> to vector<16xf32>
    %330 = vector.shape_cast %329 : vector<16xf32> to vector<16x1xf32>
    %331 = vector.broadcast %330 : vector<16x1xf32> to vector<16x16xf32>
    %332 = arith.subf %328, %331 : vector<16x16xf32>
    %333 = math.exp %332 : vector<16x16xf32>
    %cst_132 = arith.constant dense<0.000000e+00> : vector<16xf32>
    %334 = vector.multi_reduction <add>, %333, %cst_132 [1] : vector<16x16xf32> to vector<16xf32>
    %335 = vector.shape_cast %334 : vector<16xf32> to vector<16x1xf32>
    %336 = tpu.reciprocal %335 {approx = true} : vector<16x1xf32> -> vector<16x1xf32>
    %337 = vector.broadcast %336 : vector<16x1xf32> to vector<16x16xf32>
    %338 = arith.mulf %333, %337 : vector<16x16xf32>
    %339 = vector.broadcast %47 : vector<1x32xf32> to vector<16x32xf32>
    %340 = arith.mulf %277, %339 : vector<16x32xf32>
    %341 = arith.truncf %340 : vector<16x32xf32> to vector<16x32xbf16>
    %342 = arith.truncf %338 : vector<16x16xf32> to vector<16x16xbf16>
    %cst_133 = arith.constant dense<0.000000e+00> : vector<16x32xf32>
    %343 = tpu.matmul %342, %341, %cst_133 {dimension_numbers = #tpu.dot_dimension_numbers<[1], [0], [0], [1], [0, 0, 1, 1], [], []>} : vector<16x16xbf16>, vector<16x32xbf16>, vector<16x32xf32> -> vector<16x32xf32>
    %344 = arith.addf %323, %343 : vector<16x32xf32>
    %345 = vector.broadcast %54 : vector<1x32xf32> to vector<16x32xf32>
    %346 = arith.mulf %279, %345 : vector<16x32xf32>
    %347 = arith.truncf %346 : vector<16x32xf32> to vector<16x32xbf16>
    "tpu.trace_start"() <{level = 10 : i32, message = "qd,kd->qk"}> : () -> ()
    %cst_134 = arith.constant dense<0.000000e+00> : vector<16x16xf32>
    %348 = tpu.matmul %347, %280, %cst_134 {dimension_numbers = #tpu.dot_dimension_numbers<[1], [1], [0], [0], [0, 0, 1, 0], [], []>} : vector<16x32xbf16>, vector<16x32xbf16>, vector<16x16xf32> -> vector<16x16xf32>
    "tpu.trace_stop"() : () -> ()
    %349 = arith.addf %348, %25 : vector<16x16xf32>
    %cst_135 = arith.constant dense<0xFF800000> : vector<16xf32>
    %350 = vector.multi_reduction <maximumf>, %349, %cst_135 [1] : vector<16x16xf32> to vector<16xf32>
    %351 = vector.shape_cast %350 : vector<16xf32> to vector<16x1xf32>
    %352 = vector.broadcast %351 : vector<16x1xf32> to vector<16x16xf32>
    %353 = arith.subf %349, %352 : vector<16x16xf32>
    %354 = math.exp %353 : vector<16x16xf32>
    %cst_136 = arith.constant dense<0.000000e+00> : vector<16xf32>
    %355 = vector.multi_reduction <add>, %354, %cst_136 [1] : vector<16x16xf32> to vector<16xf32>
    %356 = vector.shape_cast %355 : vector<16xf32> to vector<16x1xf32>
    %357 = tpu.reciprocal %356 {approx = true} : vector<16x1xf32> -> vector<16x1xf32>
    %358 = vector.broadcast %357 : vector<16x1xf32> to vector<16x16xf32>
    %359 = arith.mulf %354, %358 : vector<16x16xf32>
    %360 = vector.broadcast %54 : vector<1x32xf32> to vector<16x32xf32>
    %361 = arith.mulf %277, %360 : vector<16x32xf32>
    %362 = arith.truncf %361 : vector<16x32xf32> to vector<16x32xbf16>
    %363 = arith.truncf %359 : vector<16x16xf32> to vector<16x16xbf16>
    %cst_137 = arith.constant dense<0.000000e+00> : vector<16x32xf32>
    %364 = tpu.matmul %363, %362, %cst_137 {dimension_numbers = #tpu.dot_dimension_numbers<[1], [0], [0], [1], [0, 0, 1, 1], [], []>} : vector<16x16xbf16>, vector<16x32xbf16>, vector<16x32xf32> -> vector<16x32xf32>
    %365 = arith.addf %344, %364 : vector<16x32xf32>
    %366 = arith.truncf %365 : vector<16x32xf32> to vector<16x32xbf16>
    %c1_138 = arith.constant 1 : index
    %c0_139 = arith.constant 0 : index
    %c0_140 = arith.constant 0 : index
    %367 = vector.load %arg12[%c1_138, %c0_139, %c0_140] : memref<2x32x32xbf16, #tpu.memory_space<vmem>>, vector<1x32x32xbf16>
    %368 = vector.shape_cast %367 : vector<1x32x32xbf16> to vector<32x32xbf16>
    %cst_141 = arith.constant dense<0.000000e+00> : vector<16x32xf32>
    %369 = tpu.matmul %366, %368, %cst_141 {dimension_numbers = #tpu.dot_dimension_numbers<[1], [0], [0], [1], [0, 0, 1, 1], [], []>} : vector<16x32xbf16>, vector<32x32xbf16>, vector<16x32xf32> -> vector<16x32xf32>
    %c1_142 = arith.constant 1 : index
    %c0_143 = arith.constant 0 : index
    %c0_144 = arith.constant 0 : index
    %370 = vector.load %arg13[%c1_142, %c0_143, %c0_144] : memref<2x1x32xf32, #tpu.memory_space<vmem>>, vector<1x1x32xf32>
    %371 = vector.shape_cast %370 : vector<1x1x32xf32> to vector<1x32xf32>
    %372 = vector.broadcast %371 : vector<1x32xf32> to vector<16x32xf32>
    %373 = arith.addf %369, %372 : vector<16x32xf32>
    %374 = arith.addf %255, %373 : vector<16x32xf32>
    %c1_145 = arith.constant 1 : index
    %c0_146 = arith.constant 0 : index
    %c0_147 = arith.constant 0 : index
    %375 = vector.load %arg14[%c1_145, %c0_146, %c0_147] : memref<2x1x32xf32, #tpu.memory_space<vmem>>, vector<1x1x32xf32>
    %376 = vector.shape_cast %375 : vector<1x1x32xf32> to vector<1x32xf32>
    %c1_148 = arith.constant 1 : index
    %c0_149 = arith.constant 0 : index
    %c0_150 = arith.constant 0 : index
    %377 = vector.load %arg15[%c1_148, %c0_149, %c0_150] : memref<2x1x32xf32, #tpu.memory_space<vmem>>, vector<1x1x32xf32>
    %378 = vector.shape_cast %377 : vector<1x1x32xf32> to vector<1x32xf32>
    %cst_151 = arith.constant dense<0.000000e+00> : vector<16xf32>
    %379 = vector.multi_reduction <add>, %374, %cst_151 [1] : vector<16x32xf32> to vector<16xf32>
    %380 = vector.shape_cast %379 : vector<16xf32> to vector<16x1xf32>
    %cst_152 = arith.constant 3.200000e+01 : f32
    %381 = vector.broadcast %cst_152 : f32 to vector<16x1xf32>
    %382 = arith.divf %380, %381 : vector<16x1xf32>
    %383 = vector.broadcast %382 : vector<16x1xf32> to vector<16x32xf32>
    %384 = arith.subf %374, %383 : vector<16x32xf32>
    %385 = arith.mulf %384, %384 : vector<16x32xf32>
    %cst_153 = arith.constant dense<0.000000e+00> : vector<16xf32>
    %386 = vector.multi_reduction <add>, %385, %cst_153 [1] : vector<16x32xf32> to vector<16xf32>
    %387 = vector.shape_cast %386 : vector<16xf32> to vector<16x1xf32>
    %cst_154 = arith.constant 3.200000e+01 : f32
    %388 = vector.broadcast %cst_154 : f32 to vector<16x1xf32>
    %389 = arith.divf %387, %388 : vector<16x1xf32>
    %390 = vector.broadcast %382 : vector<16x1xf32> to vector<16x32xf32>
    %391 = arith.subf %374, %390 : vector<16x32xf32>
    %cst_155 = arith.constant 9.99999996E-13 : f32
    %392 = vector.broadcast %cst_155 : f32 to vector<16x1xf32>
    %393 = arith.addf %389, %392 : vector<16x1xf32>
    %394 = math.rsqrt %393 : vector<16x1xf32>
    %395 = vector.broadcast %394 : vector<16x1xf32> to vector<16x32xf32>
    %396 = arith.mulf %391, %395 : vector<16x32xf32>
    %397 = vector.broadcast %376 : vector<1x32xf32> to vector<16x32xf32>
    %398 = arith.mulf %396, %397 : vector<16x32xf32>
    %399 = vector.broadcast %378 : vector<1x32xf32> to vector<16x32xf32>
    %400 = arith.addf %398, %399 : vector<16x32xf32>
    %401 = arith.truncf %400 : vector<16x32xf32> to vector<16x32xbf16>
    %c1_156 = arith.constant 1 : index
    %c0_157 = arith.constant 0 : index
    %c0_158 = arith.constant 0 : index
    %402 = vector.load %arg16[%c1_156, %c0_157, %c0_158] : memref<2x32x64xbf16, #tpu.memory_space<vmem>>, vector<1x32x64xbf16>
    %403 = vector.shape_cast %402 : vector<1x32x64xbf16> to vector<32x64xbf16>
    %cst_159 = arith.constant dense<0.000000e+00> : vector<16x64xf32>
    %404 = tpu.matmul %401, %403, %cst_159 {dimension_numbers = #tpu.dot_dimension_numbers<[1], [0], [0], [1], [0, 0, 1, 1], [], []>} : vector<16x32xbf16>, vector<32x64xbf16>, vector<16x64xf32> -> vector<16x64xf32>
    %c1_160 = arith.constant 1 : index
    %c0_161 = arith.constant 0 : index
    %c0_162 = arith.constant 0 : index
    %405 = vector.load %arg17[%c1_160, %c0_161, %c0_162] : memref<2x1x64xf32, #tpu.memory_space<vmem>>, vector<1x1x64xf32>
    %406 = vector.shape_cast %405 : vector<1x1x64xf32> to vector<1x64xf32>
    %407 = vector.broadcast %406 : vector<1x64xf32> to vector<16x64xf32>
    %408 = arith.addf %404, %407 : vector<16x64xf32>
    %cst_163 = arith.constant 5.000000e-01 : f32
    %409 = vector.broadcast %cst_163 : f32 to vector<16x64xf32>
    %410 = arith.mulf %409, %408 : vector<16x64xf32>
    %cst_164 = arith.constant 4.471500e-02 : f32
    %411 = vector.broadcast %cst_164 : f32 to vector<16x64xf32>
    %412 = arith.mulf %411, %408 : vector<16x64xf32>
    %413 = arith.mulf %412, %408 : vector<16x64xf32>
    %414 = arith.mulf %413, %408 : vector<16x64xf32>
    %415 = arith.addf %408, %414 : vector<16x64xf32>
    %cst_165 = arith.constant 0.797884583 : f32
    %416 = vector.broadcast %cst_165 : f32 to vector<16x64xf32>
    %417 = arith.mulf %416, %415 : vector<16x64xf32>
    %418 = math.tanh %417 : vector<16x64xf32>
    %cst_166 = arith.constant 1.000000e+00 : f32
    %419 = vector.broadcast %cst_166 : f32 to vector<16x64xf32>
    %420 = arith.addf %419, %418 : vector<16x64xf32>
    %421 = arith.mulf %410, %420 : vector<16x64xf32>
    %422 = arith.truncf %421 : vector<16x64xf32> to vector<16x64xbf16>
    %c1_167 = arith.constant 1 : index
    %c0_168 = arith.constant 0 : index
    %c0_169 = arith.constant 0 : index
    %423 = vector.load %arg18[%c1_167, %c0_168, %c0_169] : memref<2x64x32xbf16, #tpu.memory_space<vmem>>, vector<1x64x32xbf16>
    %424 = vector.shape_cast %423 : vector<1x64x32xbf16> to vector<64x32xbf16>
    %cst_170 = arith.constant dense<0.000000e+00> : vector<16x32xf32>
    %425 = tpu.matmul %422, %424, %cst_170 {dimension_numbers = #tpu.dot_dimension_numbers<[1], [0], [0], [1], [0, 0, 1, 1], [], []>} : vector<16x64xbf16>, vector<64x32xbf16>, vector<16x32xf32> -> vector<16x32xf32>
    %c1_171 = arith.constant 1 : index
    %c0_172 = arith.constant 0 : index
    %c0_173 = arith.constant 0 : index
    %426 = vector.load %arg19[%c1_171, %c0_172, %c0_173] : memref<2x1x32xf32, #tpu.memory_space<vmem>>, vector<1x1x32xf32>
    %427 = vector.shape_cast %426 : vector<1x1x32xf32> to vector<1x32xf32>
    %428 = vector.broadcast %427 : vector<1x32xf32> to vector<16x32xf32>
    %429 = arith.addf %425, %428 : vector<16x32xf32>
    %430 = arith.addf %400, %429 : vector<16x32xf32>
    %c1_174 = arith.constant 1 : index
    %c0_175 = arith.constant 0 : index
    %c0_176 = arith.constant 0 : index
    %431 = vector.load %arg20[%c1_174, %c0_175, %c0_176] : memref<2x1x32xf32, #tpu.memory_space<vmem>>, vector<1x1x32xf32>
    %432 = vector.shape_cast %431 : vector<1x1x32xf32> to vector<1x32xf32>
    %c1_177 = arith.constant 1 : index
    %c0_178 = arith.constant 0 : index
    %c0_179 = arith.constant 0 : index
    %433 = vector.load %arg21[%c1_177, %c0_178, %c0_179] : memref<2x1x32xf32, #tpu.memory_space<vmem>>, vector<1x1x32xf32>
    %434 = vector.shape_cast %433 : vector<1x1x32xf32> to vector<1x32xf32>
    %cst_180 = arith.constant dense<0.000000e+00> : vector<16xf32>
    %435 = vector.multi_reduction <add>, %430, %cst_180 [1] : vector<16x32xf32> to vector<16xf32>
    %436 = vector.shape_cast %435 : vector<16xf32> to vector<16x1xf32>
    %cst_181 = arith.constant 3.200000e+01 : f32
    %437 = vector.broadcast %cst_181 : f32 to vector<16x1xf32>
    %438 = arith.divf %436, %437 : vector<16x1xf32>
    %439 = vector.broadcast %438 : vector<16x1xf32> to vector<16x32xf32>
    %440 = arith.subf %430, %439 : vector<16x32xf32>
    %441 = arith.mulf %440, %440 : vector<16x32xf32>
    %cst_182 = arith.constant dense<0.000000e+00> : vector<16xf32>
    %442 = vector.multi_reduction <add>, %441, %cst_182 [1] : vector<16x32xf32> to vector<16xf32>
    %443 = vector.shape_cast %442 : vector<16xf32> to vector<16x1xf32>
    %cst_183 = arith.constant 3.200000e+01 : f32
    %444 = vector.broadcast %cst_183 : f32 to vector<16x1xf32>
    %445 = arith.divf %443, %444 : vector<16x1xf32>
    %446 = vector.broadcast %438 : vector<16x1xf32> to vector<16x32xf32>
    %447 = arith.subf %430, %446 : vector<16x32xf32>
    %cst_184 = arith.constant 9.99999996E-13 : f32
    %448 = vector.broadcast %cst_184 : f32 to vector<16x1xf32>
    %449 = arith.addf %445, %448 : vector<16x1xf32>
    %450 = math.rsqrt %449 : vector<16x1xf32>
    %451 = vector.broadcast %450 : vector<16x1xf32> to vector<16x32xf32>
    %452 = arith.mulf %447, %451 : vector<16x32xf32>
    %453 = vector.broadcast %432 : vector<1x32xf32> to vector<16x32xf32>
    %454 = arith.mulf %452, %453 : vector<16x32xf32>
    %455 = vector.broadcast %434 : vector<1x32xf32> to vector<16x32xf32>
    %456 = arith.addf %454, %455 : vector<16x32xf32>
    %c0_185 = arith.constant 0 : index
    %c0_186 = arith.constant 0 : index
    %457 = vector.load %arg3[%c0_185, %c0_186] : memref<2x16xbf16, #tpu.memory_space<vmem>>, vector<2x16xbf16>
    %458 = arith.truncf %456 : vector<16x32xf32> to vector<16x32xbf16>
    %cst_187 = arith.constant dense<0.000000e+00> : vector<2x32xf32>
    %459 = tpu.matmul %457, %458, %cst_187 {dimension_numbers = #tpu.dot_dimension_numbers<[1], [0], [0], [1], [0, 0, 1, 1], [], []>} : vector<2x16xbf16>, vector<16x32xbf16>, vector<2x32xf32> -> vector<2x32xf32>
    %460 = arith.truncf %459 : vector<2x32xf32> to vector<2x32xbf16>
    %c0_188 = arith.constant 0 : index
    %c0_189 = arith.constant 0 : index
    %461 = vector.load %arg22[%c0_188, %c0_189] : memref<32x128xbf16, #tpu.memory_space<vmem>>, vector<32x128xbf16>
    %cst_190 = arith.constant dense<0.000000e+00> : vector<2x128xf32>
    %462 = tpu.matmul %460, %461, %cst_190 {dimension_numbers = #tpu.dot_dimension_numbers<[1], [0], [0], [1], [0, 0, 1, 1], [], []>} : vector<2x32xbf16>, vector<32x128xbf16>, vector<2x128xf32> -> vector<2x128xf32>
    %c0_191 = arith.constant 0 : index
    %c0_192 = arith.constant 0 : index
    %463 = vector.load %arg23[%c0_191, %c0_192] : memref<1x128xf32, #tpu.memory_space<vmem>>, vector<1x128xf32>
    %464 = vector.broadcast %463 : vector<1x128xf32> to vector<2x128xf32>
    %465 = arith.addf %462, %464 : vector<2x128xf32>
    %c0_193 = arith.constant 0 : index
    %c0_194 = arith.constant 0 : index
    %466 = vector.load %arg24[%c0_193, %c0_194] : memref<2x128xf32, #tpu.memory_space<vmem>>, vector<2x128xf32>
    tpu.vector_store %arg24[%c0_193, %c0_194], %465 {strides = array<i32>} : memref<2x128xf32, #tpu.memory_space<vmem>>, vector<2x128xf32>,
    return
  }
  func.func @transform_0(%arg0: i32) -> (i32, i32) {
    %c0_i32 = arith.constant 0 : i32
    %c0_i32_0 = arith.constant 0 : i32
    %c0_i32_1 = arith.constant 0 : i32
    return %c0_i32, %c0_i32_0 : i32, i32
  }
  func.func @transform_1(%arg0: i32) -> (i32, i32) {
    %c0_i32 = arith.constant 0 : i32
    %c0_i32_0 = arith.constant 0 : i32
    %c0_i32_1 = arith.constant 0 : i32
    return %c0_i32, %c0_i32_0 : i32, i32
  }
  func.func @transform_2(%arg0: i32) -> (i32, i32) {
    %c0_i32 = arith.constant 0 : i32
    %c0_i32_0 = arith.constant 0 : i32
    %c0_i32_1 = arith.constant 0 : i32
    return %c0_i32, %c0_i32_0 : i32, i32
  }
  func.func @transform_3(%arg0: i32) -> (i32, i32) {
    %c0_i32 = arith.constant 0 : i32
    %c0_i32_0 = arith.constant 0 : i32
    %c0_i32_1 = arith.constant 0 : i32
    return %c0_i32, %c0_i32_0 : i32, i32
  }
  func.func @transform_4(%arg0: i32) -> (i32, i32) {
    %c0_i32 = arith.constant 0 : i32
    %c0_i32_0 = arith.constant 0 : i32
    %c0_i32_1 = arith.constant 0 : i32
    return %c0_i32, %c0_i32_0 : i32, i32
  }
  func.func @transform_5(%arg0: i32) -> (i32, i32, i32) {
    %c0_i32 = arith.constant 0 : i32
    %c0_i32_0 = arith.constant 0 : i32
    %c0_i32_1 = arith.constant 0 : i32
    %c0_i32_2 = arith.constant 0 : i32
    return %c0_i32, %c0_i32_0, %c0_i32_1 : i32, i32, i32
  }
  func.func @transform_6(%arg0: i32) -> (i32, i32, i32) {
    %c0_i32 = arith.constant 0 : i32
    %c0_i32_0 = arith.constant 0 : i32
    %c0_i32_1 = arith.constant 0 : i32
    %c0_i32_2 = arith.constant 0 : i32
    return %c0_i32, %c0_i32_0, %c0_i32_1 : i32, i32, i32
  }
  func.func @transform_7(%arg0: i32) -> (i32, i32, i32) {
    %c0_i32 = arith.constant 0 : i32
    %c0_i32_0 = arith.constant 0 : i32
    %c0_i32_1 = arith.constant 0 : i32
    %c0_i32_2 = arith.constant 0 : i32
    return %c0_i32, %c0_i32_0, %c0_i32_1 : i32, i32, i32
  }
  func.func @transform_8(%arg0: i32) -> (i32, i32, i32) {
    %c0_i32 = arith.constant 0 : i32
    %c0_i32_0 = arith.constant 0 : i32
    %c0_i32_1 = arith.constant 0 : i32
    %c0_i32_2 = arith.constant 0 : i32
    return %c0_i32, %c0_i32_0, %c0_i32_1 : i32, i32, i32
  }
  func.func @transform_9(%arg0: i32) -> (i32, i32, i32) {
    %c0_i32 = arith.constant 0 : i32
    %c0_i32_0 = arith.constant 0 : i32
    %c0_i32_1 = arith.constant 0 : i32
    %c0_i32_2 = arith.constant 0 : i32
    return %c0_i32, %c0_i32_0, %c0_i32_1 : i32, i32, i32
  }
  func.func @transform_10(%arg0: i32) -> (i32, i32, i32) {
    %c0_i32 = arith.constant 0 : i32
    %c0_i32_0 = arith.constant 0 : i32
    %c0_i32_1 = arith.constant 0 : i32
    %c0_i32_2 = arith.constant 0 : i32
    return %c0_i32, %c0_i32_0, %c0_i32_1 : i32, i32, i32
  }
  func.func @transform_11(%arg0: i32) -> (i32, i32, i32) {
    %c0_i32 = arith.constant 0 : i32
    %c0_i32_0 = arith.constant 0 : i32
    %c0_i32_1 = arith.constant 0 : i32
    %c0_i32_2 = arith.constant 0 : i32
    return %c0_i32, %c0_i32_0, %c0_i32_1 : i32, i32, i32
  }
  func.func @transform_12(%arg0: i32) -> (i32, i32, i32) {
    %c0_i32 = arith.constant 0 : i32
    %c0_i32_0 = arith.constant 0 : i32
    %c0_i32_1 = arith.constant 0 : i32
    %c0_i32_2 = arith.constant 0 : i32
    return %c0_i32, %c0_i32_0, %c0_i32_1 : i32, i32, i32
  }
  func.func @transform_13(%arg0: i32) -> (i32, i32, i32) {
    %c0_i32 = arith.constant 0 : i32
    %c0_i32_0 = arith.constant 0 : i32
    %c0_i32_1 = arith.constant 0 : i32
    %c0_i32_2 = arith.constant 0 : i32
    return %c0_i32, %c0_i32_0, %c0_i32_1 : i32, i32, i32
  }
  func.func @transform_14(%arg0: i32) -> (i32, i32, i32) {
    %c0_i32 = arith.constant 0 : i32
    %c0_i32_0 = arith.constant 0 : i32
    %c0_i32_1 = arith.constant 0 : i32
    %c0_i32_2 = arith.constant 0 : i32
    return %c0_i32, %c0_i32_0, %c0_i32_1 : i32, i32, i32
  }
  func.func @transform_15(%arg0: i32) -> (i32, i32, i32) {
    %c0_i32 = arith.constant 0 : i32
    %c0_i32_0 = arith.constant 0 : i32
    %c0_i32_1 = arith.constant 0 : i32
    %c0_i32_2 = arith.constant 0 : i32
    return %c0_i32, %c0_i32_0, %c0_i32_1 : i32, i32, i32
  }
  func.func @transform_16(%arg0: i32) -> (i32, i32, i32) {
    %c0_i32 = arith.constant 0 : i32
    %c0_i32_0 = arith.constant 0 : i32
    %c0_i32_1 = arith.constant 0 : i32
    %c0_i32_2 = arith.constant 0 : i32
    return %c0_i32, %c0_i32_0, %c0_i32_1 : i32, i32, i32
  }
  func.func @transform_17(%arg0: i32) -> (i32, i32, i32) {
    %c0_i32 = arith.constant 0 : i32
    %c0_i32_0 = arith.constant 0 : i32
    %c0_i32_1 = arith.constant 0 : i32
    %c0_i32_2 = arith.constant 0 : i32
    return %c0_i32, %c0_i32_0, %c0_i32_1 : i32, i32, i32
  }
  func.func @transform_18(%arg0: i32) -> (i32, i32, i32) {
    %c0_i32 = arith.constant 0 : i32
    %c0_i32_0 = arith.constant 0 : i32
    %c0_i32_1 = arith.constant 0 : i32
    %c0_i32_2 = arith.constant 0 : i32
    return %c0_i32, %c0_i32_0, %c0_i32_1 : i32, i32, i32
  }
  func.func @transform_19(%arg0: i32) -> (i32, i32, i32) {
    %c0_i32 = arith.constant 0 : i32
    %c0_i32_0 = arith.constant 0 : i32
    %c0_i32_1 = arith.constant 0 : i32
    %c0_i32_2 = arith.constant 0 : i32
    return %c0_i32, %c0_i32_0, %c0_i32_1 : i32, i32, i32
  }
  func.func @transform_20(%arg0: i32) -> (i32, i32, i32) {
    %c0_i32 = arith.constant 0 : i32
    %c0_i32_0 = arith.constant 0 : i32
    %c0_i32_1 = arith.constant 0 : i32
    %c0_i32_2 = arith.constant 0 : i32
    return %c0_i32, %c0_i32_0, %c0_i32_1 : i32, i32, i32
  }
  func.func @transform_21(%arg0: i32) -> (i32, i32) {
    %c0_i32 = arith.constant 0 : i32
    %c0_i32_0 = arith.constant 0 : i32
    %c0_i32_1 = arith.constant 0 : i32
    return %c0_i32, %c0_i32_0 : i32, i32
  }
  func.func @transform_22(%arg0: i32) -> (i32, i32) {
    %c0_i32 = arith.constant 0 : i32
    %c0_i32_0 = arith.constant 0 : i32
    %c0_i32_1 = arith.constant 0 : i32
    return %c0_i32, %c0_i32_0 : i32, i32
  }
  func.func @transform_23(%arg0: i32) -> (i32, i32) {
    %c0_i32 = arith.constant 0 : i32
    %c0_i32_0 = arith.constant 0 : i32
    %c0_i32_1 = arith.constant 0 : i32
    return %c0_i32, %c0_i32_0 : i32, i32
  }
}

</mosaic_0001>

<bundles_post_ra>
// kernel: tpu_custom_call.1
= control target key start
LH: loop header
LB: loop body
LE: loop exit
PB: predicated region body
PF: predicated region fallthrough
CT: control target
= control target key end

     0   :  { %s3850_s0 = inlined_call_operand.hbm [shape: f32[16,32], index: 0, kind: input, shape index: {}]   ;;  %s3851_s1 = inlined_call_operand.hbm [shape: f32[16,16], index: 1, kind: input, shape index: {}]   ;;  %s3852_s2 = inlined_call_operand.hbm [shape: bf16[2,16], index: 2, kind: input, shape index: {}]   ;;  %s3853_s3 = inlined_call_operand.hbm [shape: f32[1,32], index: 3, kind: input, shape index: {}]   ;;  %s3854_s4 = inlined_call_operand.hbm [shape: f32[1,32], index: 4, kind: input, shape index: {}]   ;;  %s3855_s5 = inlined_call_operand.vmem [shape: bf16[2,32,32], index: 5, kind: input, shape index: {}]   ;;  %s3856_s6 = inlined_call_operand.hbm [shape: f32[2,1,32], index: 6, kind: input, shape index: {}]   ;;  %s3857_s7 = inlined_call_operand.vmem [shape: bf16[2,32,32], index: 7, kind: input, shape index: {}]   ;;  %s3858_s8 = inlined_call_operand.hbm [shape: f32[2,1,32], index: 8, kind: input, shape index: {}]   ;;  %s3859_s9 = inlined_call_operand.vmem [shape: bf16[2,32,32], index: 9, kind: input, shape index: {}]   ;;  %s3860_s10 = inlined_call_operand.vmem [shape: f32[2,1,32], index: 10, kind: input, shape index: {}]   ;;  %s3861_s11 = inlined_call_operand.hbm [shape: bf16[2,32,32], index: 11, kind: input, shape index: {}]   ;;  %s3862_s12 = inlined_call_operand.vmem [shape: f32[2,1,32], index: 12, kind: input, shape index: {}]   ;;  %s3863_s13 = inlined_call_operand.vmem [shape: f32[2,1,32], index: 13, kind: input, shape index: {}]   ;;  %s3864_s14 = inlined_call_operand.vmem [shape: f32[2,1,32], index: 14, kind: input, shape index: {}]   ;;  %s3865_s15 = inlined_call_operand.hbm [shape: bf16[2,32,64], index: 15, kind: input, shape index: {}]   ;;  %s3866_s16 = inlined_call_operand.vmem [shape: f32[2,1,64], index: 16, kind: input, shape index: {}]   ;;  %s3867_s17 = inlined_call_operand.vmem [shape: bf16[2,64,32], index: 17, kind: input, shape index: {}]   ;;  %s3868_s18 = inlined_call_operand.vmem [shape: f32[2,1,32], index: 18, kind: input, shape index: {}]   ;;  %s3869_s19 = inlined_call_operand.vmem [shape: f32[2,1,32], index: 19, kind: input, shape index: {}]   ;;  %s3870_s20 = inlined_call_operand.vmem [shape: f32[2,1,32], index: 20, kind: input, shape index: {}]   ;;  %s3871_s21 = inlined_call_operand.vmem [shape: bf16[32,128], index: 21, kind: input, shape index: {}]   ;;  %s3872_s22 = inlined_call_operand.vmem [shape: f32[1,128], index: 22, kind: input, shape index: {}]   ;;  %s3873_s23 = inlined_call_operand.hbm [shape: f32[2,128], index: 23, kind: output, shape index: {}]  }
   0x1   :  { %3880 = sst [smem:[#allocation24_spill]] %s3850_s0 }
   0x2   :  { %3881 = sst [smem:[#allocation25_spill]] %s3851_s1 }
   0x3   :  { %3882 = sst [smem:[#allocation26_spill]] %s3852_s2 }
   0x4   :  { %3883 = sst [smem:[#allocation27_spill]] %s3853_s3 }
   0x5   :  { %3884 = sst [smem:[#allocation28_spill]] %s3854_s4 }
   0x6   :  { %3885 = sst [smem:[#allocation29_spill]] %s3855_s5 }
   0x7   :  { %3886 = sst [smem:[#allocation30_spill]] %s3856_s6 }
   0x8   :  { %3887 = sst [smem:[#allocation31_spill]] %s3857_s7 }
   0x9   :  { %28 = vsyncpa [#allocation3], 0 }
   0xa   :  { %29 = vsyncpa [#allocation6], 0 }
   0xb   :  { %30 = vsyncpa [#allocation9], 0 }
   0xc   :  { %31 = vsyncpa [#allocation12], 0 }
   0xd   :  { %32 = vsyncpa [#allocation15], 0 }
   0xe   :  { %33 = vsyncpa [#allocation4], 0  ;;  %s3180_s4 = smov [#allocation5]   ;;  %s3181_s24 = smov [#allocation8]  }
   0xf   :  { %s51_s30 = sshll.u32 %s3180_s4, 4  ;;  %s74_s25 = sshll.u32 %s3181_s24, 4  ;;  %s52_s30 = int_to_ptr.vmem [resolvable:$true] %s51_s30  ;;  %s75_s25 = int_to_ptr.vmem [resolvable:$true] %s74_s25 }
  0x10   :  { %s2976_s5 = scalar_lea.vmem %s52_s30, 256  ;;  %p2981_p1 = scmp.lt.s32.totalorder %s52_s30, %s52_s30 }
  0x11   :  { %p2977_p0 = scmp.ne.s32.totalorder %s52_s30, %s2976_s5  ;;  %p2982_p2 = scmp.lt.s32.totalorder %s2976_s5, %s2976_s5 }
  0x13   :  { %p2983_p3 = por %p2982_p2, %p2981_p1 }
  0x15   :  { %p2984_p4 = pnand %p2983_p3, %p2977_p0 }
  0x17   :  { %2987 = shalt.err (!%p2984_p4)
}
  0x18   :  { %s3182_s1 = smov 128   ;;  %s3183_s26 = smov 8  }
  0x19   :  { %s3888_s27 = sld [smem:[#allocation25_spill]]  ;;  %s2996_s7 = scalar_lea.vmem %s75_s25, 16 }
  0x1a   :  { %p2997_p5 = scmp.ne.s32.totalorder %s75_s25, %s2996_s7  ;;  %s3000_s28 = scalar_lea.vmem %s75_s25, 32 }
  0x1b   :  { %p3001_p6 = scmp.lt.s32.totalorder %s75_s25, %s75_s25  ;;  %p3002_p7 = scmp.lt.s32.totalorder %s3000_s28, %s2996_s7 }
  0x1d   :  { %p3003_p8 = por %p3002_p7, %p3001_p6 }
  0x1f   :  { %57 = dma.hbm_to_vmem [thread:$0]  %s3888_s27, 256, %s52_s30, [#allocation6], %s3182_s1, %s3182_s1, %s3183_s26  }
  0x20   :  { %p3004_p9 = pnand %p3003_p8, %p2997_p5 }
  0x22   :  { %3007 = shalt.err (!%p3004_p9)
}
  0x23   :  { %s3889_s0 = sld [smem:[#allocation27_spill]]  ;;  %s3184_s4 = smov [#allocation11]  }
  0x24   :  { %s95_s24 = sshll.u32 %s3184_s4, 4  ;;  %s96_s24 = int_to_ptr.vmem [resolvable:$true] %s95_s24 }
  0x25   :  { %s3016_s5 = scalar_lea.vmem %s96_s24, 32  ;;  %p3021_p11 = scmp.lt.s32.totalorder %s96_s24, %s96_s24 }
  0x26   :  { %p3017_p10 = scmp.ne.s32.totalorder %s96_s24, %s3016_s5  ;;  %p3022_p12 = scmp.lt.s32.totalorder %s3016_s5, %s3016_s5 }
  0x28   :  { %p3023_p13 = por %p3022_p12, %p3021_p11 }
  0x29   :  { %77 = dma.hbm_to_vmem [thread:$0]  %s3889_s0, 16, %s75_s25, [#allocation9]  }
  0x2a   :  { %p3024_p0 = pnand %p3023_p13, %p3017_p10 }
  0x2c   :  { %3027 = shalt.err (!%p3024_p0)
}
  0x2d   :  { %s3876_s30 = smov 16   ;;  %s3879_s2 = smov 1  }
  0x2e   :  { %s3890_s7 = sld [smem:[#allocation30_spill]]  ;;  %s3187_s25 = smov [#allocation14]  }
  0x2f   :  { %s125_s28 = sshll.u32 %s3187_s25, 4  ;;  %s126_s28 = int_to_ptr.vmem [resolvable:$true] %s125_s28 }
  0x30   :  { %s3036_s29 = scalar_lea.vmem %s126_s28, 512  ;;  %p3041_p2 = scmp.lt.s32.totalorder %s126_s28, %s126_s28 }
  0x31   :  { %p3037_p1 = scmp.ne.s32.totalorder %s126_s28, %s3036_s29  ;;  %p3042_p3 = scmp.lt.s32.totalorder %s3036_s29, %s3036_s29 }
  0x33   :  { %p3043_p4 = por %p3042_p3, %p3041_p2 }
  0x34   :  { %101 = dma.hbm_to_vmem [thread:$0]  %s3890_s7, 32, %s96_s24, [#allocation12], %s3876_s30, %s3876_s30, %s3879_s2  }
  0x35   :  { %p3044_p5 = pnand %p3043_p4, %p3037_p1 }
  0x37   :  { %3047 = shalt.err (!%p3044_p5)
}
  0x38   :  { %s3877_s3 = smov 64   ;;  %s3878_s0 = smov 4  }
  0x39   :  { %131 = dma.hbm_to_vmem [thread:$0]  %s3861_s11, 512, %s126_s28, [#allocation15], %s3877_s3, %s3877_s3, %s3878_s0  }
  0x3a   :  { %s3190_s24 = smov [#allocation2]   ;;  %s3191_s27 = smov [#allocation7]  }
  0x3b   :  { %s39_s6 = sshll.u32 %s3190_s24, 4  ;;  %s64_s7 = sshll.u32 %s3191_s27, 4  ;;  %s40_s6 = int_to_ptr.vmem [resolvable:$true] %s39_s6  ;;  %s65_s7 = int_to_ptr.vmem [resolvable:$true] %s64_s7 }
  0x3c   :  { %s3056_s25 = scalar_lea.vmem %s40_s6, 256  ;;  %p3061_p7 = scmp.lt.s32.totalorder %s40_s6, %s40_s6 }
  0x3d   :  { %p3057_p6 = scmp.ne.s32.totalorder %s40_s6, %s3056_s25  ;;  %p3062_p8 = scmp.lt.s32.totalorder %s3056_s25, %s3056_s25 }
  0x3f   :  { %p3063_p9 = por %p3062_p8, %p3061_p7 }
  0x41   :  { %p3064_p10 = pnand %p3063_p9, %p3057_p6 }
  0x43   :  { %3067 = shalt.err (!%p3064_p10)
}
  0x44   :  { %s3891_s4 = sld [smem:[#allocation24_spill]]  ;;  %s3076_s11 = scalar_lea.vmem %s65_s7, 16 }
  0x45   :  { %p3077_p11 = scmp.ne.s32.totalorder %s65_s7, %s3076_s11  ;;  %s3080_s28 = scalar_lea.vmem %s65_s7, 32 }
  0x46   :  { %p3081_p12 = scmp.lt.s32.totalorder %s65_s7, %s65_s7  ;;  %p3082_p13 = scmp.lt.s32.totalorder %s3080_s28, %s3076_s11 }
  0x48   :  { %p3083_p0 = por %p3082_p13, %p3081_p12 }
  0x4a   :  { %45 = dma.hbm_to_vmem [thread:$0]  %s3891_s4, 256, %s40_s6, [#allocation3], %s3182_s1, %s3182_s1, %s3183_s26  }
  0x4b   :  { %p3084_p1 = pnand %p3083_p0, %p3077_p11 }
  0x4d   :  { %3087 = shalt.err (!%p3084_p1)
}
  0x4e   :  { %s3892_s27 = sld [smem:[#allocation26_spill]]  ;;  %s3192_s25 = smov [#allocation10]  }
  0x4f   :  { %s84_s3 = sshll.u32 %s3192_s25, 4  ;;  %s3193_s0 = smov [#allocation13]   ;;  %s85_s3 = int_to_ptr.vmem [resolvable:$true] %s84_s3 }
  0x50   :  { %s109_s2 = sshll.u32 %s3193_s0, 4  ;;  %s3096_s30 = scalar_lea.vmem %s85_s3, 16  ;;  %s110_s2 = int_to_ptr.vmem [resolvable:$true] %s109_s2 }
  0x51   :  { %p3097_p2 = scmp.ne.s32.totalorder %s85_s3, %s3096_s30  ;;  %s3100_s1 = scalar_lea.vmem %s85_s3, 32 }
  0x52   :  { %p3101_p3 = scmp.lt.s32.totalorder %s85_s3, %s85_s3  ;;  %p3102_p4 = scmp.lt.s32.totalorder %s3100_s1, %s3096_s30 }
  0x54   :  { %67 = dma.hbm_to_vmem [thread:$0]  %s3892_s27, 16, %s65_s7, [#allocation6]  }
  0x55   :  { %p3103_p5 = por %p3102_p4, %p3101_p3 }
  0x57   :  { %p3104_p6 = pnand %p3103_p5, %p3097_p2 }
  0x59   :  { %3107 = shalt.err (!%p3104_p6)
}
  0x5a   :  { %s3893_s29 = sld [smem:[#allocation28_spill]]  ;;  %s3116_s4 = scalar_lea.vmem %s110_s2, 32 }
  0x5b   :  { %p3117_p7 = scmp.ne.s32.totalorder %s110_s2, %s3116_s4  ;;  %p3121_p8 = scmp.lt.s32.totalorder %s110_s2, %s110_s2 }
  0x5c   :  { %p3122_p9 = scmp.lt.s32.totalorder %s3116_s4, %s3116_s4 }
  0x5e   :  { %p3123_p10 = por %p3122_p9, %p3121_p8 }
  0x60   :  { %87 = dma.hbm_to_vmem [thread:$0]  %s3893_s29, 16, %s85_s3, [#allocation9]  }
  0x61   :  { %p3124_p11 = pnand %p3123_p10, %p3117_p7 }
  0x63   :  { %3127 = shalt.err (!%p3124_p11)
}
  0x64   :  { %s3894_s0 = smov 1   ;;  %s3895_s7 = smov 16  }
  0x65   :  { %115 = dma.hbm_to_vmem [thread:$0]  %s3858_s8, 32, %s110_s2, [#allocation12], %s3895_s7, %s3895_s7, %s3894_s0  }
  0x66   :  { %s3194_s5 = smov [#allocation16]  }
  0x67   :  { %s143_s24 = sshll.u32 %s3194_s5, 4  ;;  %s144_s24 = int_to_ptr.vmem [resolvable:$true] %s143_s24 }
  0x68   :  { %s3136_s27 = scalar_lea.vmem %s144_s24, 512  ;;  %p3141_p13 = scmp.lt.s32.totalorder %s144_s24, %s144_s24 }
  0x69   :  { %p3137_p12 = scmp.ne.s32.totalorder %s144_s24, %s3136_s27  ;;  %p3142_p0 = scmp.lt.s32.totalorder %s3136_s27, %s3136_s27 }
  0x6b   :  { %p3143_p1 = por %p3142_p0, %p3141_p13 }
  0x6d   :  { %p3144_p2 = pnand %p3143_p1, %p3137_p12 }
  0x6f   :  { %3147 = shalt.err (!%p3144_p2)
}
  0x70   :  { %s3896_s3 = smov 4   ;;  %s3897_s25 = smov 64  }
  0x71   :  { %149 = dma.hbm_to_vmem [thread:$0]  %s3865_s15, 512, %s144_s24, [#allocation15], %s3897_s25, %s3897_s25, %s3896_s3  }
  0x72   :  { %3168 = dma.done.wait [#allocation3], 256  }
  0x73   :  { %3169 = vsyncadd [#allocation3], 4294967040 }
  0x74   :  { %3170 = dma.done.wait [#allocation6], 272  }
  0x75   :  { %3171 = vsyncadd [#allocation6], 4294967024 }
  0x76   :  { %3172 = dma.done.wait [#allocation9], 32  }
  0x77   :  { %3173 = vsyncadd [#allocation9], 4294967264 }
  0x78   :  { %3174 = dma.done.wait [#allocation12], 64  }
  0x79   :  { %3175 = vsyncadd [#allocation12], 4294967232 }
  0x7a   :  { %3176 = dma.done.wait [#allocation15], 1024  }
  0x7b   :  { %3177 = vsyncadd [#allocation15], 4294966272  ;;  %vm196_vm0 = vcmask 261120   ;;  %v192_v0 = vld [vmem:[#allocation2] sm:$0xff]  ;;  %v193_v1 = vld [vmem:[#allocation2 + $0x8] sm:$0xff]  ;;  %s3898_s2 = sld [smem:[#allocation29_spill]]  ;;  %v242_v38 = vlaneseq }
  0x7c   :  { %v197_v2 = vsel %vm196_vm0, %v192_v0, 0.0  ;;  %v200_v3 = vsel %vm196_vm0, %v193_v1, 0.0  ;;  %s3899_s29 = sld [smem:[#allocation31_spill]]  ;;  %v3195_v16 = vmov 0.0   ;;  %vm3196_vm1 = vmmov 0   ;;  %v2850_v35 = vld [vmem:[%s3859_s9 + $0x8] sm:$0xff]  }
  0x7d   :  { %198 = vadd.xlane.f32.xlu0 %v197_v2  ;;  %2614 = vmatprep.subr.bf16.mxu0 %v3195_v16  ;;  %v2422_v27 = vld [vmem:[#allocation8] ss:$0 sm:$0xff]  ;;  %v2423_v31 = vld [vmem:[#allocation10] ss:$0 sm:$0xff]  ;;  %v243_v39 = vand.u32 127, %v242_v38  ;;  %vm513_vm12 = vcmask 130048  }
  0x7e   :  { %2622 = vmatprep.subr.bf16.mxu1 %v3195_v16  ;;  %2618 = vmatprep.mubr.msk.bf16.mxu0 %vm3196_vm1, %v3195_v16  ;;  %v2851_v37 = vld [vmem:[%s3859_s9] sm:$0xff]   ;;  %v2432_v46 = vld [vmem:[#allocation13] ss:$0 sm:$0xff]  ;;  %v3485_v38 = vld [vmem:[#allocation5 + $0x8] sm:$0xff]  ;;  %vm1179_vm13 = vcmask 523264  }
  0x7f   :  { %2626 = vmatprep.mubr.msk.bf16.mxu1 %vm3196_vm1, %v3195_v16  ;;  %v2428_v40 = vld [vmem:[#allocation11] ss:$0 sm:$0xff]  ;;  %vm254_vm2 = vcmp.ge.s32.totalorder %v243_v39, 16  ;;  %vm255_vm3 = vcmp.lt.s32.totalorder %v243_v39, 24  ;;  %vm259_vm4 = vcmp.ge.s32.totalorder %v243_v39, 24  ;;  %vm260_vm5 = vcmp.lt.s32.totalorder %v243_v39, 32 }
  0x80   :  { %vm256_vm6 = vmand %vm254_vm2, %vm255_vm3  ;;  %vm249_vm8 = vcmp.ge.s32.totalorder %v243_v39, 8  ;;  %vm250_vm9 = vcmp.lt.s32.totalorder %v243_v39, 16  ;;  %v2436_v57 = vld [vmem:[%s3860_s10] ss:$0 sm:$0xff]  ;;  %vm245_vm10 = vcmp.lt.s32.totalorder %v243_v39, 8 }
  0x81   :  { %201 = vadd.xlane.f32.xlu0 %v200_v3  ;;  %v2846_v14 = vld [vmem:[%s3898_s2 + $0x8] sm:$0xff]   ;;  %v2848_v17 = vld [vmem:[%s3898_s2] sm:$0xff]   ;;  %vm261_vm7 = vmand %vm259_vm4, %vm260_vm5  ;;  %v3413_v50 = vsel %vm256_vm6, 1.0, %v3195_v16  ;;  %v3434_v3 = vsel %vm245_vm10, 1.0, %v3195_v16 }
  0x82   :  { %v2847_v15 = vld [vmem:[%s3899_s29 + $0x8] sm:$0xff]   ;;  %2615 = vmatpush3.bf16.msra.mxu0 %v2846_v14  ;;  %v2849_v18 = vld [vmem:[%s3899_s29] sm:$0xff]   ;;  %v3416_v55 = vsel %vm261_vm7, 1.0, %v3195_v16  ;;  %vm251_vm11 = vmand %vm249_vm8, %vm250_vm9 }
  0x83   :  { %2623 = vmatpush3.bf16.msra.mxu1 %v2847_v15  ;;  %2616 = vmatprep.subr.bf16.mxu0 %v3195_v16 }
  0x84   :  { %2624 = vmatprep.subr.bf16.mxu1 %v3195_v16 }
  0x86   :  { %2617 = vmatpush3.bf16.msra.mxu0 %v2848_v17 }
  0x87   :  { %2625 = vmatpush3.bf16.msra.mxu1 %v2849_v18  ;;  %2630 = vmatprep.subr.bf16.mxu0 %v3195_v16 }
  0x88   :  { %2638 = vmatprep.subr.bf16.mxu1 %v3195_v16 }
 0x106   :  { %v199_v4 = vpop.xlane.xlu0 %198 }
 0x107   :  { %v204_v5 = vmul.f32 0.03125, %v199_v4 }
 0x109   :  { %v206_v6 = vsub.f32 %v192_v0, %v204_v5 }
 0x10a   :  { %v202_v7 = vpop.xlane.xlu0 %201 }
 0x10b   :  { %v205_v8 = vmul.f32 0.03125, %v202_v7  ;;  %v208_v9 = vmul.f32 %v206_v6, %v206_v6  ;;  %v3441_v7 = vsel %vm251_vm11, 1.0, %v3195_v16 }
 0x10d   :  { %v207_v10 = vsub.f32 %v193_v1, %v205_v8  ;;  %v210_v11 = vsel %vm196_vm0, %v208_v9, 0.0 }
 0x10e   :  { %211 = vadd.xlane.f32.xlu1 %v210_v11 }
 0x10f   :  { %v209_v12 = vmul.f32 %v207_v10, %v207_v10 }
 0x111   :  { %v213_v13 = vsel %vm196_vm0, %v209_v12, 0.0 }
 0x112   :  { %214 = vadd.xlane.f32.xlu1 %v213_v13 }
 0x197   :  { %v212_v19 = vpop.xlane.xlu1 %211 }
 0x198   :  { %v216_v20 = vmul.f32 0.03125, %v212_v19 }
 0x19a   :  { %v218_v21 = vadd.f32 1e-12, %v216_v20 }
 0x19b   :  { %v215_v22 = vpop.xlane.xlu1 %214 }
 0x19c   :  { %2876 = vrsqrt.f32 %v218_v21  ;;  %v217_v23 = vmul.f32 0.03125, %v215_v22 }
 0x19e   :  { %v219_v24 = vadd.f32 1e-12, %v217_v23 }
 0x1a0   :  { %2878 = vrsqrt.f32 %v219_v24 }
 0x1a9   :  { %v2877_v25 = vpop.eup %2876 }
 0x1aa   :  { %v222_v26 = vmul.f32 %v2877_v25, %v206_v6 }
 0x1ac   :  { %v230_v30 = vmul.f32 %v2422_v27, %v222_v26 }
 0x1ad   :  { %v2879_v28 = vpop.eup %2878 }
 0x1ae   :  { %v223_v29 = vmul.f32 %v2879_v28, %v207_v10  ;;  %v3389_v33 = vadd.f32 %v2423_v31, %v230_v30  ;;  %v3482_v30 = vld [vmem:[#allocation5] sm:$0xff] }
 0x1b0   :  { %v231_v32 = vmul.f32 %v2422_v27, %v223_v29 }
 0x1b2   :  { %v3391_v34 = vadd.f32 %v2423_v31, %v231_v32 }
 0x1b4   :  { %v264_v36 = vpack.c.bf16 %v3391_v34, %v3389_v33 }
 0x1b6   :  { %2619 = vmatmul.mubr.msk.bf16.vlgmr.msra.gmra.mxu0 %vm196_vm0, %v264_v36  ;;  %2627 = vmatmul.mubr.msk.bf16.vlgmr.msra.gmra.mxu1 %vm196_vm0, %v264_v36 }
 0x1b7   :  { %2631 = vmatpush3.bf16.msra.mxu0 %v2850_v35  ;;  %2634 = vmatprep.mubr.msk.bf16.mxu0 %vm3196_vm1, %v3195_v16 }
 0x1b8   :  { %2632 = vmatprep.subr.bf16.mxu0 %v3195_v16  ;;  %2640 = vmatprep.mubr.msk.bf16.mxu1 %vm3196_vm1, %v3195_v16 }
 0x1bb   :  { %2633 = vmatpush3.bf16.msra.mxu0 %v2851_v37 }
 0x1bc   :  { %2644 = vmatprep.subr.bf16.mxu0 %v3195_v16 }
 0x1be   :  { %2635 = vmatmul.mubr.msk.bf16.vlgmr.msra.gmra.mxu0 %vm196_vm0, %v264_v36 }
 0x1bf   :  { %2646 = vmatprep.mubr.msk.bf16.mxu0 %vm3196_vm1, %v3195_v16 }
 0x276   :  { %v325_v41 = vpop.f32.mrf.mxu0  ;;  %v389_v42 = vpop.f32.mrf.mxu1 }
 0x277   :  { %v326_v43 = vadd.f32 %v2428_v40, %v325_v41  ;;  %v390_v56 = vadd.f32 %v2432_v46, %v389_v42 }
 0x278   :  { %v2620_v44 = vpop.f32.mrf.mxu0  ;;  %v2628_v45 = vpop.f32.mrf.mxu1 }
 0x279   :  { %v460_v49 = vmul.f32 0.35355338, %v326_v43 }
 0x27a   :  { %v328_v47 = vpop.f32.mrf.mxu0  ;;  %v392_v48 = vpop.f32.mrf.mxu1 }
 0x27b   :  { %v329_v51 = vadd.f32 %v2428_v40, %v328_v47  ;;  %v393_v52 = vadd.f32 %v2432_v46, %v392_v48  ;;  %v3422_v60 = vmul.f32 %v3413_v50, %v460_v49  ;;  %v3425_v62 = vmul.f32 %v3416_v55, %v460_v49 }
 0x27c   :  { %v2621_v53 = vpop.f32.mrf.mxu0  ;;  %v2629_v54 = vpop.f32.mrf.mxu1  ;;  %v463_v22 = vmul.f32 %v3434_v3, %v460_v49  ;;  %v540_v23 = vmul.f32 %v3441_v7, %v460_v49 }
 0x27d   :  { %v461_v58 = vmul.f32 0.35355338, %v329_v51  ;;  %v462_v61 = vpack.c.bf16 %v393_v52, %v390_v56 }
 0x27e   :  { %v453_v59 = vpop.f32.mrf.mxu0 }
 0x27f   :  { %v3428_v63 = vmul.f32 %v3413_v50, %v461_v58  ;;  %v3431_v0 = vmul.f32 %v3416_v55, %v461_v58  ;;  %v454_v1 = vadd.f32 %v2436_v57, %v453_v59  ;;  %v464_v8 = vmul.f32 %v3434_v3, %v461_v58 }
 0x280   :  { %v2636_v2 = vpop.f32.mrf.mxu0  ;;  %v3445_v9 = vsel %vm196_vm0, %v462_v61, 0  ;;  %v541_v11 = vmul.f32 %v3441_v7, %v461_v58 }
 0x281   :  { %v703_v4 = vpack.c.bf16 %v3428_v63, %v3422_v60  ;;  %v822_v5 = vpack.c.bf16 %v3431_v0, %v3425_v62  ;;  %v3449_v12 = vmul.f32 %v3413_v50, %v454_v1  ;;  %v3452_v13 = vmul.f32 %v3416_v55, %v454_v1  ;;  %2639 = vmatpush3.bf16.xpose.msra.mxu1 %v3445_v9 }
 0x282   :  { %v456_v6 = vpop.f32.mrf.mxu0  ;;  %2645 = vmatpush3.bf16.xpose.msra.mxu0 %v3445_v9  ;;  %2650 = vmatprep.subr.bf16.mxu1 %v3195_v16  ;;  %v536_v20 = vmul.f32 %v3434_v3, %v454_v1  ;;  %v609_v21 = vmul.f32 %v3441_v7, %v454_v1  ;;  %v465_v28 = vpack.c.bf16 %v464_v8, %v463_v22 }
 0x283   :  { %v457_v10 = vadd.f32 %v2436_v57, %v456_v6  ;;  %2656 = vmatprep.subr.bf16.mxu0 %v3195_v16  ;;  %v542_v29 = vpack.c.bf16 %v541_v11, %v540_v23 }
 0x284   :  { %v2637_v14 = vpop.f32.mrf.mxu0 }
 0x285   :  { %v537_v15 = vmul.f32 %v3434_v3, %v457_v10  ;;  %v610_v17 = vmul.f32 %v3441_v7, %v457_v10  ;;  %v3459_v18 = vmul.f32 %v3413_v50, %v457_v10  ;;  %v3462_v19 = vmul.f32 %v3416_v55, %v457_v10 }
 0x287   :  { %v772_v24 = vpack.c.bf16 %v3459_v18, %v3449_v12  ;;  %v891_v25 = vpack.c.bf16 %v3462_v19, %v3452_v13  ;;  %v611_v26 = vpack.c.bf16 %v610_v17, %v609_v21  ;;  %v538_v27 = vpack.c.bf16 %v537_v15, %v536_v20  ;;  %v2852_v13 = vld [vmem:[#allocation14 + $0x8] sm:$0xff]   ;;  %v2853_v19 = vld [vmem:[#allocation14] sm:$0xff]  }
 0x288   :  { %2641 = vmatmul.mubr.msk.bf16.vlgmr.msra.gmra.mxu1 %vm196_vm0, %v465_v28 }
 0x289   :  { %2647 = vmatmul.mubr.msk.bf16.vlgmr.msra.gmra.mxu0 %vm196_vm0, %v542_v29  ;;  %2651 = vmatpush3.bf16.msra.mxu1 %v611_v26 }
 0x28a   :  { %2657 = vmatpush3.bf16.msra.mxu0 %v538_v27  ;;  %2652 = vmatprep.mubr.msk.bf16.mxu1 %vm3196_vm1, %v3195_v16 }
 0x28b   :  { %2662 = vmatprep.subr.bf16.mxu1 %v3195_v16  ;;  %2658 = vmatprep.mubr.msk.bf16.mxu0 %vm3196_vm1, %v3195_v16 }
 0x28c   :  { %2668 = vmatprep.subr.bf16.mxu0 %v3195_v16 }
 0x348   :  { %v506_v31 = vpop.f32.mrf.mxu1 }
 0x349   :  { %v580_v32 = vpop.f32.mrf.mxu0  ;;  %v507_v54 = vadd.f32 %v506_v31, %v3482_v30 }
 0x34a   :  { %v581_v35 = vadd.f32 %v580_v32, %v3482_v30  ;;  %v2642_v36 = vpop.f32.mrf.mxu1 }
 0x34b   :  { %v2648_v37 = vpop.f32.mrf.mxu0  ;;  %v514_v59 = vsel %vm513_vm12, %v507_v54, -inf }
 0x34c   :  { %v587_v39 = vsel %vm513_vm12, %v581_v35, -inf  ;;  %v509_v40 = vpop.f32.mrf.mxu1 }
 0x34d   :  { %588 = vmax.xlane.f32.xlu0 %v587_v39  ;;  %v583_v41 = vpop.f32.mrf.mxu0  ;;  %v510_v58 = vadd.f32 %v509_v40, %v3485_v38 }
 0x34e   :  { %v584_v42 = vadd.f32 %v583_v41, %v3485_v38  ;;  %v2643_v43 = vpop.f32.mrf.mxu1 }
 0x34f   :  { %v2649_v44 = vpop.f32.mrf.mxu0  ;;  %v517_v1 = vsel %vm513_vm12, %v510_v58, -inf }
 0x350   :  { %v590_v45 = vsel %vm513_vm12, %v584_v42, -inf }
 0x351   :  { %591 = vmax.xlane.f32.xlu1 %v590_v45 }
 0x3d6   :  { %v589_v46 = vpop.xlane.xlu0 %588 }
 0x3d7   :  { %v593_v47 = vsub.f32 %v581_v35, %v589_v46 }
 0x3d9   :  { %v595_v48 = vmul.f32 1.442695, %v593_v47 }
 0x3da   :  { %v592_v49 = vpop.xlane.xlu1 %591 }
 0x3db   :  { %2880 = vpow2.f32 %v595_v48  ;;  %v594_v51 = vsub.f32 %v584_v42, %v592_v49 }
 0x3dd   :  { %v597_v52 = vmul.f32 1.442695, %v594_v51 }
 0x3df   :  { %2882 = vpow2.f32 %v597_v52 }
 0x3e8   :  { %v2881_v53 = vpop.eup %2880 }
 0x3e9   :  { %v599_v56 = vsel %vm513_vm12, %v2881_v53, 0.0 }
 0x3ea   :  { %600 = vadd.xlane.f32.xlu0 %v599_v56 }
 0x3ec   :  { %v2883_v57 = vpop.eup %2882 }
 0x3ed   :  { %v602_v61 = vsel %vm513_vm12, %v2883_v57, 0.0 }
 0x3ee   :  { %515 = vmax.xlane.f32.xlu0 %v514_v59  ;;  %603 = vadd.xlane.f32.xlu1 %v602_v61 }
 0x3f2   :  { %518 = vmax.xlane.f32.xlu1 %v517_v1 }
 0x473   :  { %v601_v2 = vpop.xlane.xlu0 %600 }
 0x474   :  { %2884 = vrcp.f32 %v601_v2 }
 0x477   :  { %v604_v6 = vpop.xlane.xlu1 %603  ;;  %v516_v17 = vpop.xlane.xlu0 %515 }
 0x478   :  { %2886 = vrcp.f32 %v604_v6  ;;  %v520_v20 = vsub.f32 %v507_v54, %v516_v17 }
 0x47b   :  { %v519_v60 = vpop.xlane.xlu1 %518 }
 0x47c   :  { %v521_v21 = vsub.f32 %v510_v58, %v519_v60 }
 0x47e   :  { %v524_v26 = vmul.f32 1.442695, %v521_v21 }
 0x481   :  { %v2885_v8 = vpop.eup %2884 }
 0x482   :  { %v607_v11 = vmul.f32 %v2885_v8, %v2881_v53 }
 0x485   :  { %v2887_v10 = vpop.eup %2886 }
 0x486   :  { %v608_v14 = vmul.f32 %v2887_v10, %v2883_v57 }
 0x488   :  { %v612_v15 = vpack.c.bf16 %v608_v14, %v607_v11 }
 0x48a   :  { %2653 = vmatmul.mubr.msk.bf16.vlgmr.msra.gmra.mxu1 %vm513_vm12, %v612_v15 }
 0x48b   :  { %2663 = vmatpush3.bf16.xpose.msra.mxu1 %v3445_v9  ;;  %2664 = vmatprep.mubr.msk.bf16.mxu1 %vm3196_vm1, %v3195_v16 }
 0x48c   :  { %2674 = vmatprep.subr.bf16.mxu1 %v3195_v16 }
 0x492   :  { %2665 = vmatmul.mubr.msk.bf16.vlgmr.msra.gmra.mxu1 %vm196_vm0, %v703_v4 }
 0x493   :  { %2675 = vmatpush3.bf16.xpose.msra.mxu1 %v3445_v9  ;;  %2676 = vmatprep.mubr.msk.bf16.mxu1 %vm3196_vm1, %v3195_v16  ;;  %v522_v9 = vmul.f32 1.442695, %v520_v20 }
 0x494   :  { %2686 = vmatprep.subr.bf16.mxu1 %v3195_v16 }
 0x495   :  { %2888 = vpow2.f32 %v522_v9 }
 0x496   :  { %2890 = vpow2.f32 %v524_v26 }
 0x49a   :  { %2677 = vmatmul.mubr.msk.bf16.vlgmr.msra.gmra.mxu1 %vm196_vm0, %v822_v5 }
 0x49b   :  { %2690 = vmatprep.mubr.msk.bf16.mxu1 %vm3196_vm1, %v3195_v16  ;;  %2687 = vmatpush3.bf16.msra.mxu1 %v2852_v13  ;;  %v2856_v13 = vld [vmem:[%s3867_s17 + $0x18] sm:$0xff]  }
 0x49c   :  { %2688 = vmatprep.subr.bf16.mxu1 %v3195_v16 }
 0x49f   :  { %2689 = vmatpush3.bf16.msra.mxu1 %v2853_v19  ;;  %v2857_v19 = vld [vmem:[%s3867_s17 + $0x10] sm:$0xff]  }
 0x4a0   :  { %2702 = vmatprep.subr.bf16.mxu1 %v3195_v16 }
 0x4a2   :  { %v2889_v40 = vpop.eup %2888 }
 0x4a3   :  { %v526_v44 = vsel %vm513_vm12, %v2889_v40, 0.0  ;;  %v2891_v46 = vpop.eup %2890 }
 0x4a4   :  { %v529_v47 = vsel %vm513_vm12, %v2891_v46, 0.0 }
 0x54a   :  { %v3515_v63 = vpop.f32.mrf.mxu1 }
 0x54c   :  { %v2654_v4 = vpop.f32.mrf.mxu1 }
 0x54e   :  { %v3517_v22 = vpop.f32.mrf.mxu1 }
 0x550   :  { %v2655_v23 = vpop.f32.mrf.mxu1 }
 0x552   :  { %v741_v27 = vpop.f32.mrf.mxu1 }
 0x553   :  { %v742_v62 = vadd.f32 %v741_v27, %v3482_v30 }
 0x554   :  { %v2666_v0 = vpop.f32.mrf.mxu1 }
 0x555   :  { %v748_v5 = vsel %vm513_vm12, %v742_v62, -inf }
 0x556   :  { %749 = vmax.xlane.f32.xlu0 %v748_v5  ;;  %v744_v28 = vpop.f32.mrf.mxu1 }
 0x557   :  { %v745_v29 = vadd.f32 %v744_v28, %v3485_v38 }
 0x558   :  { %v2667_v31 = vpop.f32.mrf.mxu1 }
 0x559   :  { %v751_v32 = vsel %vm513_vm12, %v745_v29, -inf }
 0x55a   :  { %752 = vmax.xlane.f32.xlu1 %v751_v32  ;;  %v860_v35 = vpop.f32.mrf.mxu1 }
 0x55b   :  { %v861_v36 = vadd.f32 %v860_v35, %v3482_v30 }
 0x55c   :  { %v2678_v37 = vpop.f32.mrf.mxu1 }
 0x55d   :  { %v867_v39 = vsel %vm513_vm12, %v861_v36, -inf }
 0x55e   :  { %868 = vmax.xlane.f32.xlu0 %v867_v39  ;;  %v863_v41 = vpop.f32.mrf.mxu1 }
 0x55f   :  { %v864_v42 = vadd.f32 %v863_v41, %v3485_v38 }
 0x560   :  { %v2679_v43 = vpop.f32.mrf.mxu1 }
 0x561   :  { %v870_v45 = vsel %vm513_vm12, %v864_v42, -inf }
 0x562   :  { %527 = vadd.xlane.f32.xlu0 %v526_v44  ;;  %871 = vmax.xlane.f32.xlu1 %v870_v45 }
 0x566   :  { %530 = vadd.xlane.f32.xlu1 %v529_v47 }
 0x5df   :  { %v750_v48 = vpop.xlane.xlu0 %749 }
 0x5e0   :  { %v754_v49 = vsub.f32 %v742_v62, %v750_v48 }
 0x5e2   :  { %v756_v51 = vmul.f32 1.442695, %v754_v49 }
 0x5e3   :  { %v753_v52 = vpop.xlane.xlu1 %752 }
 0x5e4   :  { %2892 = vpow2.f32 %v756_v51  ;;  %v755_v53 = vsub.f32 %v745_v29, %v753_v52 }
 0x5e6   :  { %v758_v54 = vmul.f32 1.442695, %v755_v53 }
 0x5e7   :  { %v869_v56 = vpop.xlane.xlu0 %868 }
 0x5e8   :  { %2894 = vpow2.f32 %v758_v54  ;;  %v873_v57 = vsub.f32 %v861_v36, %v869_v56 }
 0x5ea   :  { %v875_v58 = vmul.f32 1.442695, %v873_v57 }
 0x5eb   :  { %v872_v59 = vpop.xlane.xlu1 %871  ;;  %v528_v61 = vpop.xlane.xlu0 %527 }
 0x5ec   :  { %2896 = vpow2.f32 %v875_v58  ;;  %v874_v1 = vsub.f32 %v864_v42, %v872_v59  ;;  %v2448_v59 = vld [vmem:[%s3862_s12] ss:$0 sm:$0xff] }
 0x5ed   :  { %2898 = vrcp.f32 %v528_v61 }
 0x5ee   :  { %v877_v2 = vmul.f32 1.442695, %v874_v1 }
 0x5ef   :  { %v531_v6 = vpop.xlane.xlu1 %530 }
 0x5f0   :  { %2900 = vpow2.f32 %v877_v2 }
 0x5f1   :  { %v2893_v8 = vpop.eup %2892  ;;  %2902 = vrcp.f32 %v531_v6 }
 0x5f2   :  { %v760_v10 = vsel %vm513_vm12, %v2893_v8, 0.0 }
 0x5f3   :  { %761 = vadd.xlane.f32.xlu0 %v760_v10 }
 0x5f5   :  { %v2895_v11 = vpop.eup %2894 }
 0x5f6   :  { %v763_v14 = vsel %vm513_vm12, %v2895_v11, 0.0 }
 0x5f7   :  { %764 = vadd.xlane.f32.xlu1 %v763_v14 }
 0x5f9   :  { %v2897_v15 = vpop.eup %2896 }
 0x5fa   :  { %v879_v17 = vsel %vm513_vm12, %v2897_v15, 0.0  ;;  %v2899_v20 = vpop.eup %2898 }
 0x5fb   :  { %880 = vadd.xlane.f32.xlu0 %v879_v17  ;;  %v534_v21 = vmul.f32 %v2899_v20, %v2889_v40 }
 0x5fd   :  { %v2901_v60 = vpop.eup %2900 }
 0x5fe   :  { %v2903_v4 = vpop.eup %2902  ;;  %v882_v9 = vsel %vm513_vm12, %v2901_v60, 0.0 }
 0x5ff   :  { %883 = vadd.xlane.f32.xlu1 %v882_v9  ;;  %v535_v23 = vmul.f32 %v2903_v4, %v2891_v46 }
 0x601   :  { %v539_v26 = vpack.c.bf16 %v535_v23, %v534_v21 }
 0x603   :  { %2659 = vmatmul.mubr.msk.bf16.vlgmr.msra.gmra.mxu0 %vm513_vm12, %v539_v26 }
 0x604   :  { %2669 = vmatpush3.bf16.msra.mxu0 %v772_v24  ;;  %2670 = vmatprep.mubr.msk.bf16.mxu0 %vm3196_vm1, %v3195_v16 }
 0x605   :  { %2680 = vmatprep.subr.bf16.mxu0 %v3195_v16 }
 0x67c   :  { %v762_v27 = vpop.xlane.xlu0 %761 }
 0x67d   :  { %2904 = vrcp.f32 %v762_v27  ;;  %v2854_v27 = vld [vmem:[#allocation16 + $0x8] sm:$0xff]  }
 0x680   :  { %v765_v62 = vpop.xlane.xlu1 %764 }
 0x681   :  { %2906 = vrcp.f32 %v765_v62 }
 0x684   :  { %v881_v0 = vpop.xlane.xlu0 %880 }
 0x685   :  { %2908 = vrcp.f32 %v881_v0 }
 0x688   :  { %v884_v5 = vpop.xlane.xlu1 %883 }
 0x689   :  { %2910 = vrcp.f32 %v884_v5 }
 0x68a   :  { %v2905_v28 = vpop.eup %2904 }
 0x68b   :  { %v768_v31 = vmul.f32 %v2905_v28, %v2893_v8 }
 0x68e   :  { %v2907_v29 = vpop.eup %2906 }
 0x68f   :  { %v769_v32 = vmul.f32 %v2907_v29, %v2895_v11 }
 0x691   :  { %v773_v35 = vpack.c.bf16 %v769_v32, %v768_v31 }
 0x692   :  { %v2909_v12 = vpop.eup %2908 }
 0x693   :  { %2671 = vmatmul.mubr.msk.bf16.vlgmr.msra.gmra.mxu0 %vm513_vm12, %v773_v35  ;;  %v887_v24 = vmul.f32 %v2909_v12, %v2897_v15  ;;  %v2452_v12 = vld [vmem:[%s3863_s13] ss:$0 sm:$0xff] }
 0x694   :  { %2681 = vmatpush3.bf16.msra.mxu0 %v891_v25  ;;  %2682 = vmatprep.mubr.msk.bf16.mxu0 %vm3196_vm1, %v3195_v16 }
 0x695   :  { %2694 = vmatprep.subr.bf16.mxu0 %v3195_v16 }
 0x696   :  { %v2911_v18 = vpop.eup %2910 }
 0x697   :  { %v888_v36 = vmul.f32 %v2911_v18, %v2901_v60 }
 0x699   :  { %v892_v37 = vpack.c.bf16 %v888_v36, %v887_v24 }
 0x69b   :  { %2683 = vmatmul.mubr.msk.bf16.vlgmr.msra.gmra.mxu0 %vm513_vm12, %v892_v37  ;;  %v2453_v37 = vld [vmem:[%s3864_s14] ss:$0 sm:$0xff] }
 0x69c   :  { %2698 = vmatprep.mubr.msk.bf16.mxu0 %vm3196_vm1, %v3195_v16  ;;  %2695 = vmatpush3.bf16.msra.mxu0 %v2854_v27 }
 0x69d   :  { %2696 = vmatprep.subr.bf16.mxu0 %v3195_v16 }
 0x6c3   :  { %v694_v39 = vpop.f32.mrf.mxu0 }
 0x6c4   :  { %v695_v47 = vadd.f32 %v694_v39, %v3515_v63 }
 0x6c5   :  { %v2660_v40 = vpop.f32.mrf.mxu0 }
 0x6c7   :  { %v697_v41 = vpop.f32.mrf.mxu0 }
 0x6c8   :  { %v698_v48 = vadd.f32 %v697_v41, %v3517_v22 }
 0x6c9   :  { %v2661_v42 = vpop.f32.mrf.mxu0 }
 0x753   :  { %v811_v25 = vpop.f32.mrf.mxu0 }
 0x754   :  { %v818_v51 = vadd.f32 %v811_v25, %v695_v47  ;;  %v2858_v25 = vld [vmem:[%s3867_s17 + $0x8] sm:$0xff]  }
 0x755   :  { %v2672_v43 = vpop.f32.mrf.mxu0 }
 0x756   :  { %v2859_v43 = vld [vmem:[%s3867_s17] sm:$0xff]  }
 0x757   :  { %v814_v44 = vpop.f32.mrf.mxu0 }
 0x758   :  { %v819_v52 = vadd.f32 %v814_v44, %v698_v48  ;;  %v2454_v44 = vld [vmem:[%s3866_s16] ss:$0 sm:$0xff] }
 0x759   :  { %v2673_v45 = vpop.f32.mrf.mxu0 }
 0x75b   :  { %v930_v46 = vpop.f32.mrf.mxu0 }
 0x75c   :  { %v937_v54 = vadd.f32 %v930_v46, %v818_v51 }
 0x75d   :  { %v2684_v49 = vpop.f32.mrf.mxu0 }
 0x75f   :  { %v933_v53 = vpop.f32.mrf.mxu0 }
 0x760   :  { %v938_v56 = vadd.f32 %v933_v53, %v819_v52 }
 0x761   :  { %v2685_v57 = vpop.f32.mrf.mxu0 }
 0x762   :  { %v939_v58 = vpack.c.bf16 %v938_v56, %v937_v54 }
 0x764   :  { %2691 = vmatmul.mubr.msk.bf16.vlgmr.msra.gmra.mxu1 %vm196_vm0, %v939_v58 }
 0x765   :  { %2710 = vmatprep.mubr.msk.bf16.mxu1 %vm3196_vm1, %v3195_v16  ;;  %2703 = vmatpush3.bf16.msra.mxu1 %v2856_v13 }
 0x766   :  { %2704 = vmatprep.subr.bf16.mxu1 %v3195_v16 }
 0x769   :  { %2705 = vmatpush3.bf16.msra.mxu1 %v2857_v19 }
 0x76a   :  { %2706 = vmatprep.subr.bf16.mxu1 %v3195_v16 }
 0x76d   :  { %2707 = vmatpush3.bf16.msra.mxu1 %v2858_v25 }
 0x76e   :  { %2708 = vmatprep.subr.bf16.mxu1 %v3195_v16 }
 0x771   :  { %2709 = vmatpush3.bf16.msra.mxu1 %v2859_v43 }
 0x772   :  { %2730 = vmatprep.subr.bf16.mxu1 %v3195_v16 }
 0x824   :  { %v1000_v63 = vpop.f32.mrf.mxu1 }
 0x825   :  { %v1001_v61 = vadd.f32 %v2448_v59, %v1000_v63 }
 0x826   :  { %v2692_v22 = vpop.f32.mrf.mxu1 }
 0x827   :  { %v1007_v1 = vadd.f32 %v1001_v61, %v3389_v33 }
 0x828   :  { %v1003_v2 = vpop.f32.mrf.mxu1 }
 0x829   :  { %v1004_v6 = vadd.f32 %v2448_v59, %v1003_v2  ;;  %v1011_v8 = vsel %vm196_vm0, %v1007_v1, 0.0 }
 0x82a   :  { %1012 = vadd.xlane.f32.xlu0 %v1011_v8  ;;  %v2693_v10 = vpop.f32.mrf.mxu1 }
 0x82b   :  { %v1008_v11 = vadd.f32 %v1004_v6, %v3391_v34  ;;  %v2855_v34 = vld [vmem:[#allocation16] sm:$0xff]  }
 0x82c   :  { %2697 = vmatpush3.bf16.msra.mxu0 %v2855_v34 }
 0x82d   :  { %v1014_v14 = vsel %vm196_vm0, %v1008_v11, 0.0  ;;  %2714 = vmatprep.subr.bf16.mxu0 %v3195_v16 }
 0x82e   :  { %1015 = vadd.xlane.f32.xlu1 %v1014_v14 }
 0x8b3   :  { %v1013_v15 = vpop.xlane.xlu0 %1012 }
 0x8b4   :  { %v1017_v17 = vmul.f32 0.03125, %v1013_v15 }
 0x8b6   :  { %v1019_v20 = vsub.f32 %v1007_v1, %v1017_v17 }
 0x8b7   :  { %v1016_v60 = vpop.xlane.xlu1 %1015 }
 0x8b8   :  { %v1018_v4 = vmul.f32 0.03125, %v1016_v60  ;;  %v1021_v9 = vmul.f32 %v1019_v20, %v1019_v20 }
 0x8ba   :  { %v1020_v21 = vsub.f32 %v1008_v11, %v1018_v4  ;;  %v1023_v33 = vsel %vm196_vm0, %v1021_v9, 0.0 }
 0x8bb   :  { %1024 = vadd.xlane.f32.xlu0 %v1023_v33 }
 0x8bc   :  { %v1022_v23 = vmul.f32 %v1020_v21, %v1020_v21 }
 0x8be   :  { %v1026_v26 = vsel %vm196_vm0, %v1022_v23, 0.0 }
 0x8bf   :  { %1027 = vadd.xlane.f32.xlu1 %v1026_v26 }
 0x944   :  { %v1025_v62 = vpop.xlane.xlu0 %1024 }
 0x945   :  { %v1029_v0 = vmul.f32 0.03125, %v1025_v62 }
 0x947   :  { %v1031_v5 = vadd.f32 1e-12, %v1029_v0 }
 0x948   :  { %v1028_v28 = vpop.xlane.xlu1 %1027 }
 0x949   :  { %2912 = vrsqrt.f32 %v1031_v5  ;;  %v1030_v29 = vmul.f32 0.03125, %v1028_v28 }
 0x94b   :  { %v1032_v31 = vadd.f32 1e-12, %v1030_v29 }
 0x94d   :  { %2914 = vrsqrt.f32 %v1032_v31 }
 0x956   :  { %v2913_v32 = vpop.eup %2912 }
 0x957   :  { %v1035_v35 = vmul.f32 %v2913_v32, %v1019_v20  ;;  %v2458_v20 = vld [vmem:[%s3868_s18] ss:$0 sm:$0xff] }
 0x959   :  { %v1043_v36 = vmul.f32 %v2452_v12, %v1035_v35 }
 0x95a   :  { %v2915_v18 = vpop.eup %2914 }
 0x95b   :  { %v1036_v24 = vmul.f32 %v2915_v18, %v1020_v21  ;;  %v1051_v40 = vadd.f32 %v2453_v37, %v1043_v36  ;;  %v2860_v36 = vld [vmem:[%s3898_s2 + $0x18] sm:$0xff]  }
 0x95d   :  { %v1044_v39 = vmul.f32 %v2452_v12, %v1036_v24 }
 0x95f   :  { %v1052_v41 = vadd.f32 %v2453_v37, %v1044_v39  ;;  %v2861_v37 = vld [vmem:[%s3859_s9 + $0x18] sm:$0xff]   ;;  %v2862_v39 = vld [vmem:[%s3898_s2 + $0x10] sm:$0xff]  }
 0x961   :  { %v1053_v42 = vpack.c.bf16 %v1052_v41, %v1051_v40 }
 0x963   :  { %2699 = vmatmul.mubr.msk.bf16.vlgmr.msra.gmra.mxu0 %vm196_vm0, %v1053_v42 }
 0x964   :  { %2718 = vmatprep.mubr.msk.bf16.mxu0 %vm3196_vm1, %v3195_v16  ;;  %2715 = vmatpush3.bf16.msra.mxu0 %v2860_v36 }
 0x965   :  { %2716 = vmatprep.subr.bf16.mxu0 %v3195_v16 }
 0x968   :  { %2717 = vmatpush3.bf16.msra.mxu0 %v2862_v39 }
 0x969   :  { %2722 = vmatprep.subr.bf16.mxu0 %v3195_v16 }
 0xa23   :  { %v1114_v45 = vpop.f32.mrf.mxu0 }
 0xa24   :  { %v1115_v46 = vadd.f32 %v2454_v44, %v1114_v45 }
 0xa25   :  { %v2700_v47 = vpop.f32.mrf.mxu0 }
 0xa26   :  { %v1123_v48 = vmul.f32 0.044715, %v1115_v46  ;;  %v1121_v8 = vmul.f32 0.5, %v1115_v46 }
 0xa27   :  { %v1117_v49 = vpop.f32.mrf.mxu0 }
 0xa28   :  { %v1125_v51 = vmul.f32 %v1123_v48, %v1115_v46  ;;  %v1118_v52 = vadd.f32 %v2454_v44, %v1117_v49 }
 0xa29   :  { %v2701_v53 = vpop.f32.mrf.mxu0 }
 0xa2a   :  { %v1127_v54 = vmul.f32 %v1125_v51, %v1115_v46  ;;  %v1124_v56 = vmul.f32 0.044715, %v1118_v52  ;;  %v1122_v10 = vmul.f32 0.5, %v1118_v52  ;;  %v2465_v51 = vld [vmem:[%s3870_s20] ss:$0 sm:$0xff] }
 0xa2c   :  { %v1129_v57 = vadd.f32 %v1127_v54, %v1115_v46  ;;  %v1126_v58 = vmul.f32 %v1124_v56, %v1118_v52  ;;  %v2464_v46 = vld [vmem:[%s3869_s19] ss:$0 sm:$0xff]  ;;  %v2864_v56 = vld [vmem:[%s3899_s29 + $0x18] sm:$0xff]  }
 0xa2e   :  { %v1131_v59 = vmul.f32 0.7978846, %v1129_v57  ;;  %v1128_v63 = vmul.f32 %v1126_v58, %v1118_v52  ;;  %v2865_v58 = vld [vmem:[%s3899_s29 + $0x10] sm:$0xff]  }
 0xa30   :  { %2916 = vtanh.f32 %v1131_v59  ;;  %v1130_v61 = vadd.f32 %v1128_v63, %v1118_v52  ;;  %v2470_v59 = vld [vmem:[#allocation11 + $0x1] ss:$0 sm:$0xff] }
 0xa32   :  { %v1132_v22 = vmul.f32 0.7978846, %v1130_v61 }
 0xa34   :  { %2918 = vtanh.f32 %v1132_v22 }
 0xa3d   :  { %v2917_v1 = vpop.eup %2916 }
 0xa3e   :  { %v1135_v2 = vadd.f32 1.0, %v2917_v1  ;;  %v2487_v1 = vld [vmem:[%s3860_s10 + $0x1] ss:$0 sm:$0xff]  ;;  %s3197_s10 = smov [#allocation17]  }
 0xa3f   :  { %s2409_s1 = sshll.u32 %s3197_s10, 4  ;;  %s2410_s1 = int_to_ptr.vmem [resolvable:$true] %s2409_s1 }
 0xa40   :  { %v1137_v14 = vmul.f32 %v1135_v2, %v1121_v8  ;;  %p3153_p4 = scmp.lt.s32.totalorder %s2410_s1, %s2410_s1 }
 0xa41   :  { %v2919_v6 = vpop.eup %2918 }
 0xa42   :  { %v1136_v11 = vadd.f32 1.0, %v2919_v6 }
 0xa44   :  { %v1138_v15 = vmul.f32 %v1136_v11, %v1122_v10 }
 0xa46   :  { %v1139_v17 = vpack.c.bf16 %v1138_v15, %v1137_v14 }
 0xa48   :  { %2711 = vmatmul.mubr.msk.bf16.vlgmr.msra.gmra.mxu1 %vm1179_vm13, %v1139_v17 }
 0xa49   :  { %2734 = vmatprep.mubr.msk.bf16.mxu1 %vm3196_vm1, %v3195_v16  ;;  %2731 = vmatpush3.bf16.msra.mxu1 %v2861_v37 }
 0xa4a   :  { %2732 = vmatprep.subr.bf16.mxu1 %v3195_v16 }
 0xb08   :  { %v1217_v60 = vpop.f32.mrf.mxu1 }
 0xb09   :  { %v1218_v4 = vadd.f32 %v2458_v20, %v1217_v60 }
 0xb0a   :  { %v2712_v9 = vpop.f32.mrf.mxu1 }
 0xb0b   :  { %v1224_v21 = vadd.f32 %v1218_v4, %v1051_v40  ;;  %v2863_v40 = vld [vmem:[%s3859_s9 + $0x10] sm:$0xff]  }
 0xb0c   :  { %v1220_v33 = vpop.f32.mrf.mxu1  ;;  %2733 = vmatpush3.bf16.msra.mxu1 %v2863_v40 }
 0xb0d   :  { %v1221_v23 = vadd.f32 %v2458_v20, %v1220_v33  ;;  %v1228_v26 = vsel %vm196_vm0, %v1224_v21, 0.0  ;;  %2744 = vmatprep.subr.bf16.mxu1 %v3195_v16 }
 0xb0e   :  { %1229 = vadd.xlane.f32.xlu0 %v1228_v26  ;;  %v2713_v27 = vpop.f32.mrf.mxu1 }
 0xb0f   :  { %v1225_v34 = vadd.f32 %v1221_v23, %v1052_v41 }
 0xb11   :  { %v1231_v62 = vsel %vm196_vm0, %v1225_v34, 0.0 }
 0xb12   :  { %1232 = vadd.xlane.f32.xlu1 %v1231_v62 }
 0xb97   :  { %v1230_v0 = vpop.xlane.xlu0 %1229 }
 0xb98   :  { %v1234_v5 = vmul.f32 0.03125, %v1230_v0 }
 0xb9a   :  { %v1236_v28 = vsub.f32 %v1224_v21, %v1234_v5  ;;  %v2478_v5 = vld [vmem:[#allocation13 + $0x1] ss:$0 sm:$0xff] }
 0xb9b   :  { %v1233_v29 = vpop.xlane.xlu1 %1232 }
 0xb9c   :  { %v1235_v31 = vmul.f32 0.03125, %v1233_v29  ;;  %v1238_v32 = vmul.f32 %v1236_v28, %v1236_v28 }
 0xb9e   :  { %v1237_v35 = vsub.f32 %v1225_v34, %v1235_v31  ;;  %v1240_v12 = vsel %vm196_vm0, %v1238_v32, 0.0 }
 0xb9f   :  { %1241 = vadd.xlane.f32.xlu0 %v1240_v12 }
 0xba0   :  { %v1239_v18 = vmul.f32 %v1237_v35, %v1237_v35 }
 0xba2   :  { %v1243_v24 = vsel %vm196_vm0, %v1239_v18, 0.0 }
 0xba3   :  { %1244 = vadd.xlane.f32.xlu1 %v1243_v24 }
 0xc28   :  { %v1242_v41 = vpop.xlane.xlu0 %1241 }
 0xc29   :  { %v1246_v42 = vmul.f32 0.03125, %v1242_v41 }
 0xc2b   :  { %v1248_v13 = vadd.f32 1e-12, %v1246_v42 }
 0xc2c   :  { %v1245_v19 = vpop.xlane.xlu1 %1244 }
 0xc2d   :  { %2920 = vrsqrt.f32 %v1248_v13  ;;  %v1247_v25 = vmul.f32 0.03125, %v1245_v19 }
 0xc2f   :  { %v1249_v43 = vadd.f32 1e-12, %v1247_v25 }
 0xc31   :  { %2922 = vrsqrt.f32 %v1249_v43 }
 0xc3a   :  { %v2921_v44 = vpop.eup %2920 }
 0xc3b   :  { %v1252_v45 = vmul.f32 %v2921_v44, %v1236_v28 }
 0xc3d   :  { %v1260_v49 = vmul.f32 %v2464_v46, %v1252_v45 }
 0xc3e   :  { %v2923_v47 = vpop.eup %2922 }
 0xc3f   :  { %v1253_v48 = vmul.f32 %v2923_v47, %v1237_v35  ;;  %v3628_v53 = vadd.f32 %v2465_v51, %v1260_v49 }
 0xc41   :  { %v1261_v52 = vmul.f32 %v2464_v46, %v1253_v48 }
 0xc43   :  { %v3630_v54 = vadd.f32 %v2465_v51, %v1261_v52 }
 0xc45   :  { %v1270_v57 = vpack.c.bf16 %v3630_v54, %v3628_v53 }
 0xc47   :  { %2719 = vmatmul.mubr.msk.bf16.vlgmr.msra.gmra.mxu0 %vm196_vm0, %v1270_v57  ;;  %2735 = vmatmul.mubr.msk.bf16.vlgmr.msra.gmra.mxu1 %vm196_vm0, %v1270_v57 }
 0xc48   :  { %2723 = vmatpush3.bf16.msra.mxu0 %v2864_v56  ;;  %2726 = vmatprep.mubr.msk.bf16.mxu0 %vm3196_vm1, %v3195_v16 }
 0xc49   :  { %2724 = vmatprep.subr.bf16.mxu0 %v3195_v16  ;;  %2746 = vmatprep.mubr.msk.bf16.mxu1 %vm3196_vm1, %v3195_v16 }
 0xc4c   :  { %2725 = vmatpush3.bf16.msra.mxu0 %v2865_v58 }
 0xc4d   :  { %2738 = vmatprep.subr.bf16.mxu0 %v3195_v16 }
 0xc4f   :  { %2727 = vmatmul.mubr.msk.bf16.vlgmr.msra.gmra.mxu0 %vm196_vm0, %v1270_v57 }
 0xc50   :  { %2740 = vmatprep.mubr.msk.bf16.mxu0 %vm3196_vm1, %v3195_v16 }
 0xd07   :  { %v1333_v63 = vpop.f32.mrf.mxu0  ;;  %v1465_v61 = vpop.f32.mrf.mxu1 }
 0xd08   :  { %v1334_v22 = vadd.f32 %v2470_v59, %v1333_v63  ;;  %v1466_v11 = vadd.f32 %v2487_v1, %v1465_v61 }
 0xd09   :  { %v2720_v2 = vpop.f32.mrf.mxu0  ;;  %v2736_v6 = vpop.f32.mrf.mxu1 }
 0xd0a   :  { %v1472_v14 = vmul.f32 0.35355338, %v1334_v22  ;;  %v3658_v33 = vmul.f32 %v3413_v50, %v1466_v11  ;;  %v3661_v23 = vmul.f32 %v3416_v55, %v1466_v11  ;;  %v1547_v19 = vmul.f32 %v3434_v3, %v1466_v11 }
 0xd0b   :  { %v1336_v8 = vpop.f32.mrf.mxu0  ;;  %v1468_v10 = vpop.f32.mrf.mxu1  ;;  %v1620_v25 = vmul.f32 %v3441_v7, %v1466_v11 }
 0xd0c   :  { %v1337_v15 = vadd.f32 %v2470_v59, %v1336_v8  ;;  %v1469_v17 = vadd.f32 %v2487_v1, %v1468_v10  ;;  %v3667_v27 = vmul.f32 %v3413_v50, %v1472_v14  ;;  %v3670_v34 = vmul.f32 %v3416_v55, %v1472_v14 }
 0xd0d   :  { %v2721_v20 = vpop.f32.mrf.mxu0  ;;  %v2737_v60 = vpop.f32.mrf.mxu1  ;;  %v1475_v42 = vmul.f32 %v3434_v3, %v1472_v14  ;;  %v1551_v13 = vmul.f32 %v3441_v7, %v1472_v14 }
 0xd0e   :  { %v1473_v4 = vmul.f32 0.35355338, %v1337_v15  ;;  %v3655_v9 = vmul.f32 %v3413_v50, %v1469_v17  ;;  %v3664_v26 = vmul.f32 %v3416_v55, %v1469_v17  ;;  %v1548_v40 = vmul.f32 %v3434_v3, %v1469_v17 }
 0xd0f   :  { %v1399_v21 = vpop.f32.mrf.mxu0  ;;  %v1621_v41 = vmul.f32 %v3441_v7, %v1469_v17 }
 0xd10   :  { %v3673_v62 = vmul.f32 %v3413_v50, %v1473_v4  ;;  %v3676_v0 = vmul.f32 %v3416_v55, %v1473_v4  ;;  %v1783_v29 = vpack.c.bf16 %v3655_v9, %v3658_v33  ;;  %v1902_v31 = vpack.c.bf16 %v3664_v26, %v3661_v23  ;;  %v2866_v23 = vld [vmem:[#allocation14 + $0x18] sm:$0xff]   ;;  %v2867_v26 = vld [vmem:[#allocation14 + $0x10] sm:$0xff]  }
 0xd11   :  { %v2728_v28 = vpop.f32.mrf.mxu0  ;;  %v1400_v50 = vadd.f32 %v2478_v5, %v1399_v21  ;;  %v1476_v37 = vmul.f32 %v3434_v3, %v1473_v4  ;;  %v1552_v39 = vmul.f32 %v3441_v7, %v1473_v4  ;;  %v1622_v45 = vpack.c.bf16 %v1621_v41, %v1620_v25 }
 0xd12   :  { %v1714_v32 = vpack.c.bf16 %v3673_v62, %v3667_v27  ;;  %v1833_v35 = vpack.c.bf16 %v3676_v0, %v3670_v34  ;;  %v1549_v46 = vpack.c.bf16 %v1548_v40, %v1547_v19 }
 0xd13   :  { %v1402_v12 = vpop.f32.mrf.mxu0  ;;  %v1477_v43 = vpack.c.bf16 %v1476_v37, %v1475_v42  ;;  %v1553_v44 = vpack.c.bf16 %v1552_v39, %v1551_v13 }
 0xd14   :  { %v1403_v18 = vadd.f32 %v2478_v5, %v1402_v12 }
 0xd15   :  { %v2729_v24 = vpop.f32.mrf.mxu0 }
 0xd16   :  { %v1474_v55 = vpack.c.bf16 %v1403_v18, %v1400_v50 }
 0xd18   :  { %v3687_v36 = vsel %vm196_vm0, %v1474_v55, 0 }
 0xd19   :  { %2739 = vmatpush3.bf16.xpose.msra.mxu0 %v3687_v36  ;;  %2745 = vmatpush3.bf16.xpose.msra.mxu1 %v3687_v36 }
 0xd1a   :  { %2750 = vmatprep.subr.bf16.mxu0 %v3195_v16  ;;  %2756 = vmatprep.subr.bf16.mxu1 %v3195_v16 }
 0xd20   :  { %2741 = vmatmul.mubr.msk.bf16.vlgmr.msra.gmra.mxu0 %vm196_vm0, %v1477_v43  ;;  %2747 = vmatmul.mubr.msk.bf16.vlgmr.msra.gmra.mxu1 %vm196_vm0, %v1553_v44 }
 0xd21   :  { %2751 = vmatpush3.bf16.msra.mxu0 %v1622_v45  ;;  %2757 = vmatpush3.bf16.msra.mxu1 %v1549_v46 }
 0xd22   :  { %2752 = vmatprep.mubr.msk.bf16.mxu0 %vm3196_vm1, %v3195_v16  ;;  %2762 = vmatprep.subr.bf16.mxu0 %v3195_v16 }
 0xd23   :  { %2758 = vmatprep.mubr.msk.bf16.mxu1 %vm3196_vm1, %v3195_v16  ;;  %2768 = vmatprep.subr.bf16.mxu1 %v3195_v16 }
 0xde0   :  { %v1518_v3 = vpop.f32.mrf.mxu0  ;;  %v1591_v7 = vpop.f32.mrf.mxu1 }
 0xde1   :  { %v1592_v47 = vadd.f32 %v1591_v7, %v3482_v30  ;;  %v1519_v11 = vadd.f32 %v1518_v3, %v3482_v30 }
 0xde2   :  { %v2742_v48 = vpop.f32.mrf.mxu0  ;;  %v2748_v49 = vpop.f32.mrf.mxu1 }
 0xde3   :  { %v1598_v51 = vsel %vm513_vm12, %v1592_v47, -inf  ;;  %v1525_v60 = vsel %vm513_vm12, %v1519_v11, -inf }
 0xde4   :  { %1599 = vmax.xlane.f32.xlu0 %v1598_v51  ;;  %v1521_v52 = vpop.f32.mrf.mxu0  ;;  %v1594_v56 = vpop.f32.mrf.mxu1 }
 0xde5   :  { %v1595_v57 = vadd.f32 %v1594_v56, %v3485_v38  ;;  %v1522_v17 = vadd.f32 %v1521_v52, %v3485_v38 }
 0xde6   :  { %v2743_v58 = vpop.f32.mrf.mxu0  ;;  %v2749_v59 = vpop.f32.mrf.mxu1 }
 0xde7   :  { %v1601_v63 = vsel %vm513_vm12, %v1595_v57, -inf  ;;  %v1528_v4 = vsel %vm513_vm12, %v1522_v17, -inf }
 0xde8   :  { %1602 = vmax.xlane.f32.xlu1 %v1601_v63 }
 0xe6d   :  { %v1600_v61 = vpop.xlane.xlu0 %1599 }
 0xe6e   :  { %v1604_v22 = vsub.f32 %v1592_v47, %v1600_v61 }
 0xe70   :  { %v1606_v1 = vmul.f32 1.442695, %v1604_v22 }
 0xe71   :  { %v1603_v2 = vpop.xlane.xlu1 %1602 }
 0xe72   :  { %2924 = vpow2.f32 %v1606_v1  ;;  %v1605_v6 = vsub.f32 %v1595_v57, %v1603_v2 }
 0xe74   :  { %v1608_v8 = vmul.f32 1.442695, %v1605_v6 }
 0xe76   :  { %2926 = vpow2.f32 %v1608_v8 }
 0xe7f   :  { %v2925_v10 = vpop.eup %2924 }
 0xe80   :  { %v1610_v14 = vsel %vm513_vm12, %v2925_v10, 0.0 }
 0xe81   :  { %1611 = vadd.xlane.f32.xlu0 %v1610_v14 }
 0xe83   :  { %v2927_v15 = vpop.eup %2926 }
 0xe84   :  { %v1613_v20 = vsel %vm513_vm12, %v2927_v15, 0.0 }
 0xe85   :  { %1614 = vadd.xlane.f32.xlu1 %v1613_v20  ;;  %1526 = vmax.xlane.f32.xlu0 %v1525_v60 }
 0xe89   :  { %1529 = vmax.xlane.f32.xlu1 %v1528_v4 }
 0xf0a   :  { %v1612_v21 = vpop.xlane.xlu0 %1611 }
 0xf0b   :  { %2928 = vrcp.f32 %v1612_v21 }
 0xf0e   :  { %v1615_v5 = vpop.xlane.xlu1 %1614  ;;  %v1527_v55 = vpop.xlane.xlu0 %1526 }
 0xf0f   :  { %2930 = vrcp.f32 %v1615_v5  ;;  %v1531_v37 = vsub.f32 %v1519_v11, %v1527_v55 }
 0xf12   :  { %v1530_v27 = vpop.xlane.xlu1 %1529 }
 0xf13   :  { %v1532_v39 = vsub.f32 %v1522_v17, %v1530_v27 }
 0xf15   :  { %v1535_v42 = vmul.f32 1.442695, %v1532_v39 }
 0xf18   :  { %v2929_v28 = vpop.eup %2928 }
 0xf19   :  { %v1618_v50 = vmul.f32 %v2929_v28, %v2925_v10 }
 0xf1c   :  { %v2931_v12 = vpop.eup %2930 }
 0xf1d   :  { %v1619_v18 = vmul.f32 %v2931_v12, %v2927_v15 }
 0xf1f   :  { %v1623_v24 = vpack.c.bf16 %v1619_v18, %v1618_v50 }
 0xf21   :  { %2753 = vmatmul.mubr.msk.bf16.vlgmr.msra.gmra.mxu0 %vm513_vm12, %v1623_v24 }
 0xf22   :  { %2763 = vmatpush3.bf16.xpose.msra.mxu0 %v3687_v36  ;;  %2764 = vmatprep.mubr.msk.bf16.mxu0 %vm3196_vm1, %v3195_v16 }
 0xf23   :  { %2774 = vmatprep.subr.bf16.mxu0 %v3195_v16 }
 0xf29   :  { %2765 = vmatmul.mubr.msk.bf16.vlgmr.msra.gmra.mxu0 %vm196_vm0, %v1714_v32 }
 0xf2a   :  { %2775 = vmatpush3.bf16.xpose.msra.mxu0 %v3687_v36  ;;  %2776 = vmatprep.mubr.msk.bf16.mxu0 %vm3196_vm1, %v3195_v16  ;;  %v1533_v36 = vmul.f32 1.442695, %v1531_v37 }
 0xf2b   :  { %2786 = vmatprep.subr.bf16.mxu0 %v3195_v16 }
 0xf2c   :  { %2932 = vpow2.f32 %v1533_v36 }
 0xf2d   :  { %2934 = vpow2.f32 %v1535_v42 }
 0xf31   :  { %2777 = vmatmul.mubr.msk.bf16.vlgmr.msra.gmra.mxu0 %vm196_vm0, %v1833_v35 }
 0xf32   :  { %2790 = vmatprep.mubr.msk.bf16.mxu0 %vm3196_vm1, %v3195_v16  ;;  %2787 = vmatpush3.bf16.msra.mxu0 %v2866_v23 }
 0xf33   :  { %2788 = vmatprep.subr.bf16.mxu0 %v3195_v16 }
 0xf36   :  { %2789 = vmatpush3.bf16.msra.mxu0 %v2867_v26 }
 0xf37   :  { %2802 = vmatprep.subr.bf16.mxu0 %v3195_v16 }
 0xf39   :  { %v2933_v47 = vpop.eup %2932 }
 0xf3a   :  { %v1537_v52 = vsel %vm513_vm12, %v2933_v47, 0.0  ;;  %v2935_v57 = vpop.eup %2934 }
 0xf3b   :  { %v1540_v58 = vsel %vm513_vm12, %v2935_v57, 0.0 }
 0xfe1   :  { %v3738_v62 = vpop.f32.mrf.mxu0 }
 0xfe3   :  { %v2754_v32 = vpop.f32.mrf.mxu0 }
 0xfe5   :  { %v3740_v40 = vpop.f32.mrf.mxu0 }
 0xfe7   :  { %v2755_v41 = vpop.f32.mrf.mxu0 }
 0xfe9   :  { %v1752_v13 = vpop.f32.mrf.mxu0 }
 0xfea   :  { %v1753_v34 = vadd.f32 %v1752_v13, %v3482_v30 }
 0xfeb   :  { %v2766_v0 = vpop.f32.mrf.mxu0 }
 0xfec   :  { %v1759_v35 = vsel %vm513_vm12, %v1753_v34, -inf }
 0xfed   :  { %1760 = vmax.xlane.f32.xlu0 %v1759_v35  ;;  %v1755_v19 = vpop.f32.mrf.mxu0 }
 0xfee   :  { %v1756_v25 = vadd.f32 %v1755_v19, %v3485_v38 }
 0xfef   :  { %v2767_v43 = vpop.f32.mrf.mxu0 }
 0xff0   :  { %v1762_v44 = vsel %vm513_vm12, %v1756_v25, -inf }
 0xff1   :  { %1763 = vmax.xlane.f32.xlu1 %v1762_v44  ;;  %v1871_v45 = vpop.f32.mrf.mxu0 }
 0xff2   :  { %v1872_v46 = vadd.f32 %v1871_v45, %v3482_v30 }
 0xff3   :  { %v2778_v3 = vpop.f32.mrf.mxu0 }
 0xff4   :  { %v1878_v7 = vsel %vm513_vm12, %v1872_v46, -inf }
 0xff5   :  { %1879 = vmax.xlane.f32.xlu0 %v1878_v7  ;;  %v1874_v48 = vpop.f32.mrf.mxu0 }
 0xff6   :  { %v1875_v49 = vadd.f32 %v1874_v48, %v3485_v38 }
 0xff7   :  { %v2779_v51 = vpop.f32.mrf.mxu0 }
 0xff8   :  { %v1881_v56 = vsel %vm513_vm12, %v1875_v49, -inf }
 0xff9   :  { %1538 = vadd.xlane.f32.xlu0 %v1537_v52  ;;  %1882 = vmax.xlane.f32.xlu1 %v1881_v56 }
 0xffd   :  { %1541 = vadd.xlane.f32.xlu1 %v1540_v58 }
0x1076   :  { %v1761_v30 = vpop.xlane.xlu0 %1760 }
0x1077   :  { %v1765_v59 = vsub.f32 %v1753_v34, %v1761_v30 }
0x1079   :  { %v1767_v63 = vmul.f32 1.442695, %v1765_v59 }
0x107a   :  { %v1764_v61 = vpop.xlane.xlu1 %1763 }
0x107b   :  { %2936 = vpow2.f32 %v1767_v63  ;;  %v1766_v22 = vsub.f32 %v1756_v25, %v1764_v61  ;;  %v2500_v61 = vld [vmem:[%s3862_s12 + $0x1] ss:$0 sm:$0xff] }
0x107d   :  { %v1769_v1 = vmul.f32 1.442695, %v1766_v22 }
0x107e   :  { %v1880_v2 = vpop.xlane.xlu0 %1879 }
0x107f   :  { %2938 = vpow2.f32 %v1769_v1  ;;  %v1884_v38 = vsub.f32 %v1872_v46, %v1880_v2 }
0x1081   :  { %v1886_v6 = vmul.f32 1.442695, %v1884_v38 }
0x1082   :  { %v1883_v8 = vpop.xlane.xlu1 %1882  ;;  %v1539_v10 = vpop.xlane.xlu0 %1538 }
0x1083   :  { %2940 = vpow2.f32 %v1886_v6  ;;  %v1885_v11 = vsub.f32 %v1875_v49, %v1883_v8 }
0x1084   :  { %2942 = vrcp.f32 %v1539_v10 }
0x1085   :  { %v1888_v14 = vmul.f32 1.442695, %v1885_v11 }
0x1086   :  { %v1542_v15 = vpop.xlane.xlu1 %1541 }
0x1087   :  { %2944 = vpow2.f32 %v1888_v14 }
0x1088   :  { %v2937_v17 = vpop.eup %2936  ;;  %2946 = vrcp.f32 %v1542_v15 }
0x1089   :  { %v1771_v20 = vsel %vm513_vm12, %v2937_v17, 0.0 }
0x108a   :  { %1772 = vadd.xlane.f32.xlu0 %v1771_v20 }
0x108c   :  { %v2939_v60 = vpop.eup %2938 }
0x108d   :  { %v1774_v4 = vsel %vm513_vm12, %v2939_v60, 0.0 }
0x108e   :  { %1775 = vadd.xlane.f32.xlu1 %v1774_v4 }
0x1090   :  { %v2941_v21 = vpop.eup %2940 }
0x1091   :  { %v1890_v5 = vsel %vm513_vm12, %v2941_v21, 0.0  ;;  %v2943_v28 = vpop.eup %2942 }
0x1092   :  { %1891 = vadd.xlane.f32.xlu0 %v1890_v5  ;;  %v1545_v24 = vmul.f32 %v2943_v28, %v2933_v47 }
0x1094   :  { %v2945_v12 = vpop.eup %2944 }
0x1095   :  { %v2947_v50 = vpop.eup %2946  ;;  %v1893_v18 = vsel %vm513_vm12, %v2945_v12, 0.0 }
0x1096   :  { %1894 = vadd.xlane.f32.xlu1 %v1893_v18  ;;  %v1546_v55 = vmul.f32 %v2947_v50, %v2935_v57 }
0x1098   :  { %v1550_v37 = vpack.c.bf16 %v1546_v55, %v1545_v24 }
0x109a   :  { %2759 = vmatmul.mubr.msk.bf16.vlgmr.msra.gmra.mxu1 %vm513_vm12, %v1550_v37 }
0x109b   :  { %2769 = vmatpush3.bf16.msra.mxu1 %v1783_v29  ;;  %2770 = vmatprep.mubr.msk.bf16.mxu1 %vm3196_vm1, %v3195_v16 }
0x109c   :  { %2780 = vmatprep.subr.bf16.mxu1 %v3195_v16 }
0x1113   :  { %v1773_v27 = vpop.xlane.xlu0 %1772 }
0x1114   :  { %2948 = vrcp.f32 %v1773_v27 }
0x1117   :  { %v1776_v32 = vpop.xlane.xlu1 %1775 }
0x1118   :  { %2950 = vrcp.f32 %v1776_v32 }
0x111b   :  { %v1892_v36 = vpop.xlane.xlu0 %1891 }
0x111c   :  { %2952 = vrcp.f32 %v1892_v36 }
0x111f   :  { %v1895_v39 = vpop.xlane.xlu1 %1894 }
0x1120   :  { %2954 = vrcp.f32 %v1895_v39  ;;  %v2506_v39 = vld [vmem:[%s3863_s13 + $0x1] ss:$0 sm:$0xff] }
0x1121   :  { %v2949_v41 = vpop.eup %2948 }
0x1122   :  { %v1779_v13 = vmul.f32 %v2949_v41, %v2937_v17 }
0x1125   :  { %v2951_v42 = vpop.eup %2950 }
0x1126   :  { %v1780_v34 = vmul.f32 %v2951_v42, %v2939_v60 }
0x1128   :  { %v1784_v0 = vpack.c.bf16 %v1780_v34, %v1779_v13  ;;  %v2507_v34 = vld [vmem:[%s3864_s14 + $0x1] ss:$0 sm:$0xff] }
0x1129   :  { %v2953_v9 = vpop.eup %2952 }
0x112a   :  { %2771 = vmatmul.mubr.msk.bf16.vlgmr.msra.gmra.mxu1 %vm513_vm12, %v1784_v0  ;;  %v1898_v29 = vmul.f32 %v2953_v9, %v2941_v21 }
0x112b   :  { %2781 = vmatpush3.bf16.msra.mxu1 %v1902_v31  ;;  %2782 = vmatprep.mubr.msk.bf16.mxu1 %vm3196_vm1, %v3195_v16 }
0x112c   :  { %2794 = vmatprep.subr.bf16.mxu1 %v3195_v16 }
0x112d   :  { %v2955_v33 = vpop.eup %2954 }
0x112e   :  { %v1899_v35 = vmul.f32 %v2955_v33, %v2945_v12  ;;  %v2868_v12 = vld [vmem:[#allocation16 + $0x18] sm:$0xff]  }
0x1130   :  { %v1903_v19 = vpack.c.bf16 %v1899_v35, %v1898_v29  ;;  %v2870_v35 = vld [vmem:[%s3867_s17 + $0x38] sm:$0xff]  }
0x1132   :  { %2783 = vmatmul.mubr.msk.bf16.vlgmr.msra.gmra.mxu1 %vm513_vm12, %v1903_v19  ;;  %v2871_v19 = vld [vmem:[%s3867_s17 + $0x30] sm:$0xff]  }
0x1133   :  { %2798 = vmatprep.mubr.msk.bf16.mxu1 %vm3196_vm1, %v3195_v16  ;;  %2795 = vmatpush3.bf16.msra.mxu1 %v2868_v12 }
0x1134   :  { %2796 = vmatprep.subr.bf16.mxu1 %v3195_v16 }
0x115a   :  { %v1705_v25 = vpop.f32.mrf.mxu1 }
0x115b   :  { %v1706_v48 = vadd.f32 %v1705_v25, %v3738_v62  ;;  %v2872_v25 = vld [vmem:[%s3867_s17 + $0x28] sm:$0xff]  }
0x115c   :  { %v2760_v43 = vpop.f32.mrf.mxu1 }
0x115d   :  { %v2873_v43 = vld [vmem:[%s3867_s17 + $0x20] sm:$0xff]  }
0x115e   :  { %v1708_v44 = vpop.f32.mrf.mxu1 }
0x115f   :  { %v1709_v49 = vadd.f32 %v1708_v44, %v3740_v40  ;;  %v2509_v44 = vld [vmem:[%s3866_s16 + $0x1] ss:$0 sm:$0xff] }
0x1160   :  { %v2761_v45 = vpop.f32.mrf.mxu1 }
0x11ea   :  { %v1822_v31 = vpop.f32.mrf.mxu1 }
0x11eb   :  { %v1829_v52 = vadd.f32 %v1822_v31, %v1706_v48 }
0x11ec   :  { %v2772_v46 = vpop.f32.mrf.mxu1 }
0x11ee   :  { %v1825_v3 = vpop.f32.mrf.mxu1 }
0x11ef   :  { %v1830_v56 = vadd.f32 %v1825_v3, %v1709_v49 }
0x11f0   :  { %v2773_v7 = vpop.f32.mrf.mxu1 }
0x11f2   :  { %v1941_v47 = vpop.f32.mrf.mxu1 }
0x11f3   :  { %v1948_v58 = vadd.f32 %v1941_v47, %v1829_v52 }
0x11f4   :  { %v2784_v51 = vpop.f32.mrf.mxu1 }
0x11f6   :  { %v1944_v57 = vpop.f32.mrf.mxu1 }
0x11f7   :  { %v1949_v30 = vadd.f32 %v1944_v57, %v1830_v56 }
0x11f8   :  { %v2785_v59 = vpop.f32.mrf.mxu1 }
0x11f9   :  { %v1950_v63 = vpack.c.bf16 %v1949_v30, %v1948_v58 }
0x11fb   :  { %2791 = vmatmul.mubr.msk.bf16.vlgmr.msra.gmra.mxu0 %vm196_vm0, %v1950_v63 }
0x11fc   :  { %2810 = vmatprep.mubr.msk.bf16.mxu0 %vm3196_vm1, %v3195_v16  ;;  %2803 = vmatpush3.bf16.msra.mxu0 %v2870_v35  ;;  %v2531_v35 = vld [vmem:[%s3870_s20 + $0x1] ss:$0 sm:$0xff] }
0x11fd   :  { %2804 = vmatprep.subr.bf16.mxu0 %v3195_v16 }
0x1200   :  { %2805 = vmatpush3.bf16.msra.mxu0 %v2871_v19 }
0x1201   :  { %2806 = vmatprep.subr.bf16.mxu0 %v3195_v16 }
0x1204   :  { %2807 = vmatpush3.bf16.msra.mxu0 %v2872_v25 }
0x1205   :  { %2808 = vmatprep.subr.bf16.mxu0 %v3195_v16 }
0x1208   :  { %2809 = vmatpush3.bf16.msra.mxu0 %v2873_v43 }
0x12bb   :  { %v2013_v62 = vpop.f32.mrf.mxu0 }
0x12bc   :  { %v2014_v22 = vadd.f32 %v2500_v61, %v2013_v62 }
0x12bd   :  { %v2792_v40 = vpop.f32.mrf.mxu0 }
0x12be   :  { %v2020_v1 = vadd.f32 %v2014_v22, %v3628_v53 }
0x12bf   :  { %v2016_v2 = vpop.f32.mrf.mxu0 }
0x12c0   :  { %v2017_v38 = vadd.f32 %v2500_v61, %v2016_v2  ;;  %v2026_v6 = vsel %vm196_vm0, %v2020_v1, 0.0 }
0x12c1   :  { %2027 = vadd.xlane.f32.xlu0 %v2026_v6  ;;  %v2793_v8 = vpop.f32.mrf.mxu0  ;;  %v2522_v6 = vld [vmem:[%s3868_s18 + $0x1] ss:$0 sm:$0xff] }
0x12c2   :  { %v2021_v10 = vadd.f32 %v2017_v38, %v3630_v54  ;;  %v2869_v54 = vld [vmem:[#allocation16 + $0x10] sm:$0xff]  }
0x12c3   :  { %2797 = vmatpush3.bf16.msra.mxu1 %v2869_v54 }
0x12c4   :  { %v2029_v11 = vsel %vm196_vm0, %v2021_v10, 0.0  ;;  %2814 = vmatprep.subr.bf16.mxu1 %v3195_v16 }
0x12c5   :  { %2030 = vadd.xlane.f32.xlu1 %v2029_v11 }
0x134a   :  { %v2028_v14 = vpop.xlane.xlu0 %2027 }
0x134b   :  { %v2032_v15 = vmul.f32 0.03125, %v2028_v14 }
0x134d   :  { %v2034_v17 = vsub.f32 %v2020_v1, %v2032_v15 }
0x134e   :  { %v2031_v20 = vpop.xlane.xlu1 %2030 }
0x134f   :  { %v2033_v60 = vmul.f32 0.03125, %v2031_v20  ;;  %v2036_v4 = vmul.f32 %v2034_v17, %v2034_v17 }
0x1351   :  { %v2035_v21 = vsub.f32 %v2021_v10, %v2033_v60  ;;  %v2038_v53 = vsel %vm196_vm0, %v2036_v4, 0.0 }
0x1352   :  { %2039 = vadd.xlane.f32.xlu0 %v2038_v53 }
0x1353   :  { %v2037_v5 = vmul.f32 %v2035_v21, %v2035_v21 }
0x1355   :  { %v2041_v28 = vsel %vm196_vm0, %v2037_v5, 0.0 }
0x1356   :  { %2042 = vadd.xlane.f32.xlu1 %v2041_v28 }
0x13db   :  { %v2040_v50 = vpop.xlane.xlu0 %2039 }
0x13dc   :  { %v2044_v18 = vmul.f32 0.03125, %v2040_v50 }
0x13de   :  { %v2046_v24 = vadd.f32 1e-12, %v2044_v18 }
0x13df   :  { %v2043_v55 = vpop.xlane.xlu1 %2042 }
0x13e0   :  { %2956 = vrsqrt.f32 %v2046_v24  ;;  %v2045_v37 = vmul.f32 0.03125, %v2043_v55 }
0x13e2   :  { %v2047_v27 = vadd.f32 1e-12, %v2045_v37 }
0x13e4   :  { %2958 = vrsqrt.f32 %v2047_v27 }
0x13ed   :  { %v2957_v32 = vpop.eup %2956 }
0x13ee   :  { %v2050_v36 = vmul.f32 %v2957_v32, %v2034_v17 }
0x13f0   :  { %v2058_v13 = vmul.f32 %v2506_v39, %v2050_v36 }
0x13f1   :  { %v2959_v41 = vpop.eup %2958 }
0x13f2   :  { %v2051_v42 = vmul.f32 %v2959_v41, %v2035_v21  ;;  %v2066_v9 = vadd.f32 %v2507_v34, %v2058_v13 }
0x13f4   :  { %v2059_v0 = vmul.f32 %v2506_v39, %v2051_v42 }
0x13f6   :  { %v2067_v33 = vadd.f32 %v2507_v34, %v2059_v0  ;;  %v2530_v0 = vld [vmem:[%s3869_s19 + $0x1] ss:$0 sm:$0xff] }
0x13f8   :  { %v2068_v29 = vpack.c.bf16 %v2067_v33, %v2066_v9 }
0x13fa   :  { %2799 = vmatmul.mubr.msk.bf16.vlgmr.msra.gmra.mxu1 %vm196_vm0, %v2068_v29 }
0x13fb   :  { %2816 = vmatprep.mubr.msk.bf16.mxu1 %vm3196_vm1, %v3195_v16 }
0x14ba   :  { %v2131_v45 = vpop.f32.mrf.mxu1 }
0x14bb   :  { %v2132_v23 = vadd.f32 %v2509_v44, %v2131_v45  ;;  %v2290_v45 = vld [vmem:[#allocation7] sm:$0x1] }
0x14bc   :  { %v2800_v26 = vpop.f32.mrf.mxu1 }
0x14bd   :  { %v2140_v31 = vmul.f32 0.044715, %v2132_v23  ;;  %v2138_v62 = vmul.f32 0.5, %v2132_v23  ;;  %v2875_v26 = vld [vmem:[%s3871_s21] sm:$0xff]  }
0x14be   :  { %v2134_v46 = vpop.f32.mrf.mxu1 }
0x14bf   :  { %v2142_v3 = vmul.f32 %v2140_v31, %v2132_v23  ;;  %v2135_v7 = vadd.f32 %v2509_v44, %v2134_v46 }
0x14c0   :  { %v2801_v47 = vpop.f32.mrf.mxu1 }
0x14c1   :  { %v2144_v48 = vmul.f32 %v2142_v3, %v2132_v23  ;;  %v2141_v49 = vmul.f32 0.044715, %v2135_v7  ;;  %v2139_v22 = vmul.f32 0.5, %v2135_v7 }
0x14c3   :  { %v2146_v51 = vadd.f32 %v2144_v48, %v2132_v23  ;;  %v2143_v52 = vmul.f32 %v2141_v49, %v2135_v7  ;;  %v2874_v23 = vld [vmem:[%s3871_s21 + $0x8] sm:$0xff]   ;;  %v2533_v48 = vld [vmem:[%s3872_s22] ss:$0 sm:$0xff]  ;;  %s3148_s21 = scalar_lea.vmem %s2410_s1, 32 }
0x14c4   :  { %p3149_p3 = scmp.ne.s32.totalorder %s2410_s1, %s3148_s21  ;;  %p3154_p5 = scmp.lt.s32.totalorder %s3148_s21, %s3148_s21 }
0x14c5   :  { %v2148_v56 = vmul.f32 0.7978846, %v2146_v51  ;;  %v2145_v57 = vmul.f32 %v2143_v52, %v2135_v7 }
0x14c6   :  { %p3155_p6 = por %p3154_p5, %p3153_p4 }
0x14c7   :  { %2960 = vtanh.f32 %v2148_v56  ;;  %v2147_v58 = vadd.f32 %v2145_v57, %v2135_v7 }
0x14c8   :  { %p3156_p7 = pnand %p3155_p6, %p3149_p3 }
0x14c9   :  { %v2149_v30 = vmul.f32 0.7978846, %v2147_v58 }
0x14cb   :  { %2962 = vtanh.f32 %v2149_v30 }
0x14d4   :  { %v2961_v59 = vpop.eup %2960 }
0x14d5   :  { %v2152_v63 = vadd.f32 1.0, %v2961_v59 }
0x14d7   :  { %v2154_v1 = vmul.f32 %v2152_v63, %v2138_v62 }
0x14d8   :  { %v2963_v61 = vpop.eup %2962 }
0x14d9   :  { %v2153_v40 = vadd.f32 1.0, %v2963_v61 }
0x14db   :  { %v2155_v2 = vmul.f32 %v2153_v40, %v2139_v22 }
0x14dd   :  { %v2156_v38 = vpack.c.bf16 %v2155_v2, %v2154_v1 }
0x14df   :  { %2811 = vmatmul.mubr.msk.bf16.vlgmr.msra.gmra.mxu0 %vm1179_vm13, %v2156_v38 }
0x159f   :  { %v2235_v8 = vpop.f32.mrf.mxu0 }
0x15a0   :  { %v2236_v10 = vadd.f32 %v2522_v6, %v2235_v8 }
0x15a1   :  { %v2812_v11 = vpop.f32.mrf.mxu0 }
0x15a2   :  { %v2242_v14 = vadd.f32 %v2236_v10, %v2066_v9 }
0x15a3   :  { %v2238_v15 = vpop.f32.mrf.mxu0 }
0x15a4   :  { %v2239_v17 = vadd.f32 %v2522_v6, %v2238_v15  ;;  %v2248_v20 = vsel %vm196_vm0, %v2242_v14, 0.0 }
0x15a5   :  { %2249 = vadd.xlane.f32.xlu0 %v2248_v20  ;;  %v2813_v60 = vpop.f32.mrf.mxu0 }
0x15a6   :  { %v2243_v4 = vadd.f32 %v2239_v17, %v2067_v33 }
0x15a8   :  { %v2251_v21 = vsel %vm196_vm0, %v2243_v4, 0.0 }
0x15a9   :  { %2252 = vadd.xlane.f32.xlu1 %v2251_v21 }
0x162e   :  { %v2250_v53 = vpop.xlane.xlu0 %2249 }
0x162f   :  { %v2254_v5 = vmul.f32 0.03125, %v2250_v53 }
0x1631   :  { %v2256_v28 = vsub.f32 %v2242_v14, %v2254_v5 }
0x1632   :  { %v2253_v12 = vpop.xlane.xlu1 %2252 }
0x1633   :  { %v2255_v54 = vmul.f32 0.03125, %v2253_v12  ;;  %v2258_v50 = vmul.f32 %v2256_v28, %v2256_v28 }
0x1635   :  { %v2257_v18 = vsub.f32 %v2243_v4, %v2255_v54  ;;  %v2260_v24 = vsel %vm196_vm0, %v2258_v50, 0.0 }
0x1636   :  { %2261 = vadd.xlane.f32.xlu0 %v2260_v24 }
0x1637   :  { %v2259_v55 = vmul.f32 %v2257_v18, %v2257_v18 }
0x1639   :  { %v2263_v37 = vsel %vm196_vm0, %v2259_v55, 0.0 }
0x163a   :  { %2264 = vadd.xlane.f32.xlu1 %v2263_v37 }
0x16bf   :  { %v2262_v27 = vpop.xlane.xlu0 %2261 }
0x16c0   :  { %v2266_v32 = vmul.f32 0.03125, %v2262_v27 }
0x16c2   :  { %v2268_v36 = vadd.f32 1e-12, %v2266_v32 }
0x16c3   :  { %v2265_v39 = vpop.xlane.xlu1 %2264 }
0x16c4   :  { %2964 = vrsqrt.f32 %v2268_v36  ;;  %v2267_v41 = vmul.f32 0.03125, %v2265_v39 }
0x16c6   :  { %v2269_v42 = vadd.f32 1e-12, %v2267_v41 }
0x16c8   :  { %2966 = vrsqrt.f32 %v2269_v42 }
0x16d1   :  { %v2965_v13 = vpop.eup %2964 }
0x16d2   :  { %v2272_v34 = vmul.f32 %v2965_v13, %v2256_v28 }
0x16d4   :  { %v2280_v29 = vmul.f32 %v2530_v0, %v2272_v34 }
0x16d5   :  { %v2967_v9 = vpop.eup %2966 }
0x16d6   :  { %v2273_v33 = vmul.f32 %v2967_v9, %v2257_v18  ;;  %v2288_v25 = vadd.f32 %v2531_v35, %v2280_v29 }
0x16d8   :  { %v2281_v19 = vmul.f32 %v2530_v0, %v2273_v33 }
0x16da   :  { %v2289_v43 = vadd.f32 %v2531_v35, %v2281_v19 }
0x16dc   :  { %v2291_v44 = vpack.c.bf16 %v2289_v43, %v2288_v25 }
0x16de   :  { %2815 = vmatpush3.bf16.msra.mxu1 %v2291_v44 }
0x16df   :  { %2820 = vmatprep.subr.bf16.mxu1 %v3195_v16 }
0x16e1   :  { %2817 = vmatmul.mubr.msk.bf16.vlgmr.msra.gmra.mxu1 %vm513_vm12, %v2290_v45 }
0x16e2   :  { %2821 = vmatpush3.bf16.msra.mxu1 %v2874_v23  ;;  %2824 = vmatprep.mubr.msk.bf16.mxu1 %vm3196_vm1, %v3195_v16 }
0x16e3   :  { %2822 = vmatprep.subr.bf16.mxu1 %v3195_v16 }
0x16e6   :  { %2823 = vmatpush3.bf16.msra.mxu1 %v2875_v26 }
0x17a1   :  { %v2329_v31 = vpop.f32.mrf.mxu1 }
0x17a2   :  { %v2335_v46 = vpack.c.bf16 %v2329_v31, %v2329_v31 }
0x17a3   :  { %v2818_v3 = vpop.f32.mrf.mxu1 }
0x17a4   :  { %2825 = vmatmul.mubr.msk.bf16.vlgmr.msra.gmra.mxu1 %vm196_vm0, %v2335_v46 }
0x17a5   :  { %v2332_v7 = vpop.f32.mrf.mxu1 }
0x17a7   :  { %v2819_v47 = vpop.f32.mrf.mxu1 }
0x1864   :  { %v2396_v49 = vpop.f32.mrf.mxu1 }
0x1865   :  { %v2397_v16 = vadd.f32 %v2533_v48, %v2396_v49 }
0x1866   :  { %v2826_v51 = vpop.f32.mrf.mxu1 }
0x1867   :  { %2402 = vst [vmem:[#allocation17] sm:$0x3] %v2397_v16 }
0x1868   :  { %v2399_v52 = vpop.f32.mrf.mxu1 }
0x1869   :  { %3159 = shalt.err (!%p3156_p7)
}
0x186a   :  { %2412 = dma.vmem_to_hbm [thread:$0]  %s2410_s1, 32, %s3873_s23, [#allocation4]   ;;  %v2827_v56 = vpop.f32.mrf.mxu1 }
0x186b   :  { %3178 = dma.done.wait [#allocation4], 32  }
0x186c   :  { %3179 = vsyncadd [#allocation4], 4294967264 }
0x186d   :  { %2416 = vsyncpa [#allocation3], 1 }
0x186e   :  { %2417 = vsyncpa [#allocation6], 1 }
0x186f   :  { %2418 = vsyncpa [#allocation9], 1 }
0x1870   :  { %2419 = vsyncpa [#allocation12], 1 }
0x1871   :  { %2420 = vsyncpa [#allocation15], 1 }
0x1872   :  { %2421 = vsyncpa [#allocation4], 1 }

</bundles_post_ra>
